<compile_context>
chip_gen: v5e
topology: v5e:2x2
jax: 0.10.0
libtpu: 0.0.40
codegen_flags: <defaults>
</compile_context>

<pallas_src>
import numpy as np
import jax
import jax.numpy as jnp
from jax.experimental import pallas as pl
from jax.experimental.pallas import tpu as pltpu

H = W = 8                      # module assumes 8x8 input
POOL_K, POOL_S = 5, 3
OUT_HW = (H - POOL_K) // POOL_S + 1        # = 2
N_WINDOWS = OUT_HW * OUT_HW                # = 4
C1, C2 = 128, 768                          # conv1 / conv2 output channels
BN_EPS = 1e-5
LANE = 128
SUBLANE = 8


def _round_up(a, b):
    return (a + b - 1) // b * b


# --------------------------------------------------------------------------
# Pallas kernel: the whole head (pool folded into conv1, convs, BN, classifier)
# --------------------------------------------------------------------------
def _aux_head_kernel(x_ref, wf_ref, s1_ref, b1_ref, w2_ref, s2_ref, b2_ref,
                     wc_ref, bc_ref, out_ref):
    # ReLU on the raw features, then (avg-pool + 1x1 conv) as one bf16 matmul.
    x = jnp.maximum(x_ref[...], 0.0)                                   # (TN, C*64) bf16
    y = jnp.dot(x, wf_ref[...], preferred_element_type=jnp.float32)    # (TN, 512) f32
    # BatchNorm2d(128) folded (inference) + ReLU, f32 on the VPU.
    y = jnp.maximum(y * s1_ref[...] + b1_ref[...], 0.0)
    # Conv2d(128, 768, 2, bias=False): all 4 taps fused into one K=512 matmul.
    z = jnp.dot(y.astype(jnp.bfloat16), w2_ref[...],
                preferred_element_type=jnp.float32)                    # (TN, 768) f32
    # BatchNorm2d(768) folded (inference) + ReLU.
    z = jnp.maximum(z * s2_ref[...] + b2_ref[...], 0.0)
    # Linear(768, num_classes), padded to a lane-dense 128-wide output.
    logits = jnp.dot(z.astype(jnp.bfloat16), wc_ref[...],
                     preferred_element_type=jnp.float32) + bc_ref[...]
    out_ref[...] = logits.astype(out_ref.dtype)


def aux_head_forward(x, kparams, *, max_tile_n=256):
    """x: (N, C, 8, 8) float32 NCHW. Returns (N, num_classes) float32."""
    n, c, h, w = x.shape
    assert (h, w) == (H, W), "AuxiliaryHeadCIFAR assumes 8x8 spatial input"
    k1 = c * H * W
    lanes = kparams["wc"].shape[1]
    num_classes = int(kparams["num_classes"])

    # Batch tiling: pad to a sublane multiple, tile up to 256 rows per step.
    tn = min(max_tile_n, _round_up(n, SUBLANE))
    n_pad = _round_up(n, tn)

    x2d = x.reshape(n, k1)
    if n_pad != n:
        x2d = jnp.pad(x2d, ((0, n_pad - n), (0, 0)))
    x2d = x2d.astype(jnp.bfloat16)

    const = lambda i: (0, 0)     # weights: resident, never re-fetched per tile
    grid = (n_pad // tn,)

    flops = 2 * n_pad * (k1 * N_WINDOWS * C1 + N_WINDOWS * C1 * C2 + C2 * lanes)
    bytes_accessed = (
        x2d.size * 2 + n_pad * lanes * 4
        + (kparams["w_fold"].size + kparams["w2"].size + kparams["wc"].size) * 2
        + (kparams["s1"].size + kparams["b1"].size + kparams["s2"].size
           + kparams["b2"].size + kparams["bc"].size) * 4)

    out = pl.pallas_call(
        _aux_head_kernel,
        out_shape=jax.ShapeDtypeStruct((n_pad, lanes), jnp.float32),
        grid=grid,
        in_specs=[
            pl.BlockSpec((tn, k1), lambda i: (i, 0)),        # x batch tile
            pl.BlockSpec((k1, N_WINDOWS * C1), const),       # folded pool + conv1 (bf16)
            pl.BlockSpec((1, N_WINDOWS * C1), const),        # bn1 scale (tiled x4)
            pl.BlockSpec((1, N_WINDOWS * C1), const),        # bn1 bias  (tiled x4)
            pl.BlockSpec((N_WINDOWS * C1, C2), const),       # conv2, 4 taps fused (bf16)
            pl.BlockSpec((1, C2), const),                    # bn2 scale
            pl.BlockSpec((1, C2), const),                    # bn2 bias
            pl.BlockSpec((C2, lanes), const),                # classifier W (lane-padded)
            pl.BlockSpec((1, lanes), const),                 # classifier b (lane-padded)
        ],
        out_specs=pl.BlockSpec((tn, lanes), lambda i: (i, 0)),
        compiler_params=pltpu.CompilerParams(
            dimension_semantics=("parallel",),
            vmem_limit_bytes=64 * 1024 * 1024),
        cost_estimate=pl.CostEstimate(
            flops=flops, transcendentals=0, bytes_accessed=bytes_accessed),
    )(x2d, kparams["w_fold"], kparams["s1"], kparams["b1"],
      kparams["w2"], kparams["s2"], kparams["b2"],
      kparams["wc"], kparams["bc"])

    return out[:n, :num_classes]


# --------------------------------------------------------------------------
# Deterministic parameter construction (synthetic weights, PyTorch shapes)
# --------------------------------------------------------------------------
def init_raw_params(key, C, num_classes):
    ks = jax.random.split(key, 12)
    raw = dict(
        conv1_w=jax.random.normal(ks[0], (C1, C, 1, 1), jnp.float32) * 0.1,
        conv2_w=jax.random.normal(ks[1], (C2, C1, 2, 2), jnp.float32) * 0.05,
        fc_w=jax.random.normal(ks[2], (num_classes, C2), jnp.float32) * 0.05,
        fc_b=jax.random.normal(ks[3], (num_classes,), jnp.float32) * 0.1,
        bn1=(1.0 + 0.1 * jax.random.normal(ks[4], (C1,), jnp.float32),        # gamma
             0.1 * jax.random.normal(ks[5], (C1,), jnp.float32),              # beta
             0.1 * jax.random.normal(ks[6], (C1,), jnp.float32),              # running_mean
             jnp.abs(jax.random.normal(ks[7], (C1,), jnp.float32)) + 0.5),    # running_var
        bn2=(1.0 + 0.1 * jax.random.normal(ks[8], (C2,), jnp.float32),
             0.1 * jax.random.normal(ks[9], (C2,), jnp.float32),
             0.1 * jax.random.normal(ks[10], (C2,), jnp.float32),
             jnp.abs(jax.random.normal(ks[11], (C2,), jnp.float32)) + 0.5),
    )
    return raw


def arrange_for_kernel(raw):
    C = raw["conv1_w"].shape[1]
    num_classes = raw["fc_w"].shape[0]
    lanes = _round_up(num_classes, LANE)

    # Fold AvgPool2d(5, stride=3) into the 1x1 conv:
    #   w_fold[c*64 + h*8 + w, hw*128 + k] = conv1_w[k, c] / 25
    #   iff spatial position (h, w) lies inside pool window hw, else 0.
    w1 = np.asarray(raw["conv1_w"][:, :, 0, 0], np.float32).T          # (C, 128)
    w_fold = np.zeros((C * H * W, N_WINDOWS * C1), np.float32)
    for oh in range(OUT_HW):
        for ow in range(OUT_HW):
            hw = oh * OUT_HW + ow
            for i in range(POOL_K):
                for j in range(POOL_K):
                    p = (oh * POOL_S + i) * W + (ow * POOL_S + j)
                    w_fold[p::H * W, hw * C1:(hw + 1) * C1] = w1 / (POOL_K * POOL_K)

    # Conv2d(128, 768, 2) flattened to (4*128, 768), tap order matching w_fold's
    # window order (hw = kh*2 + kw).
    w2 = np.transpose(np.asarray(raw["conv2_w"], np.float32),
                      (2, 3, 1, 0)).reshape(N_WINDOWS * C1, C2)

    def fold_bn(bn):
        g, b, m, v = (np.asarray(t, np.float32) for t in bn)
        s = g / np.sqrt(v + BN_EPS)
        return s, b - m * s

    s1, b1 = fold_bn(raw["bn1"])
    s2, b2 = fold_bn(raw["bn2"])

    # Lane-pad the classifier to 128 output columns.
    wc = np.zeros((C2, lanes), np.float32)
    wc[:, :num_classes] = np.asarray(raw["fc_w"], np.float32).T
    bc = np.zeros((1, lanes), np.float32)
    bc[0, :num_classes] = np.asarray(raw["fc_b"], np.float32)

    return dict(
        w_fold=jnp.asarray(w_fold, jnp.bfloat16),
        s1=jnp.asarray(np.tile(s1, N_WINDOWS).reshape(1, -1)),
        b1=jnp.asarray(np.tile(b1, N_WINDOWS).reshape(1, -1)),
        w2=jnp.asarray(w2, jnp.bfloat16),
        s2=jnp.asarray(s2.reshape(1, -1)),
        b2=jnp.asarray(b2.reshape(1, -1)),
        wc=jnp.asarray(wc, jnp.bfloat16),
        bc=jnp.asarray(bc),
        num_classes=num_classes,
    )


# --------------------------------------------------------------------------
# Pure-JAX NCHW f32 reference (for correctness check)
# --------------------------------------------------------------------------
def reference_forward(x, raw):
    x = jnp.maximum(x, 0.0)
    rows = []
    for ph in range(0, H - POOL_K + 1, POOL_S):
        cols = []
        for pw in range(0, W - POOL_K + 1, POOL_S):
            cols.append(jnp.mean(x[:, :, ph:ph + POOL_K, pw:pw + POOL_K], axis=(2, 3)))
        rows.append(jnp.stack(cols, axis=-1))
    pooled = jnp.stack(rows, axis=-2)                                  # (N, C, 2, 2)

    y = jnp.einsum('nchw,oc->nohw', pooled, raw["conv1_w"][:, :, 0, 0])
    g1, be1, rm1, rv1 = raw["bn1"]
    y = (y - rm1[None, :, None, None]) / jnp.sqrt(rv1 + BN_EPS)[None, :, None, None]
    y = jnp.maximum(y * g1[None, :, None, None] + be1[None, :, None, None], 0.0)

    z = jnp.einsum('nchw,ochw->no', y, raw["conv2_w"])                 # (N, 768)
    g2, be2, rm2, rv2 = raw["bn2"]
    z = jnp.maximum((z - rm2) / jnp.sqrt(rv2 + BN_EPS) * g2 + be2, 0.0)
    return z @ raw["fc_w"].T + raw["fc_b"]


if __name__ == "__main__":
    N, C, num_classes = 2, 4, 10
    key = jax.random.PRNGKey(0)
    kx, kp = jax.random.split(key)
    x = jax.random.normal(kx, (N, C, H, W), jnp.float32)

    raw = init_raw_params(kp, C, num_classes)
    kparams = arrange_for_kernel(raw)

    out = jax.block_until_ready(aux_head_forward(x, kparams))
    ref = reference_forward(x, raw)
    np.testing.assert_allclose(np.asarray(out), np.asarray(ref), rtol=2e-2, atol=2e-2)
    print("KERNEL_OK")
</pallas_src>

<mosaic_0001>
module attributes {stable_mosaic.version = 11 : i64} {
  func.func @_aux_head_kernel(%arg0: i32, %arg1: memref<8x256xbf16, #tpu.memory_space<vmem>>, %arg2: memref<256x512xbf16, #tpu.memory_space<vmem>>, %arg3: memref<1x512xf32, #tpu.memory_space<vmem>>, %arg4: memref<1x512xf32, #tpu.memory_space<vmem>>, %arg5: memref<512x768xbf16, #tpu.memory_space<vmem>>, %arg6: memref<1x768xf32, #tpu.memory_space<vmem>>, %arg7: memref<1x768xf32, #tpu.memory_space<vmem>>, %arg8: memref<768x128xbf16, #tpu.memory_space<vmem>>, %arg9: memref<1x128xf32, #tpu.memory_space<vmem>>, %arg10: memref<8x128xf32, #tpu.memory_space<vmem>>) attributes {dimension_semantics = [#tpu.dimension_semantics<parallel>], iteration_bounds = array<i64: 1>, scalar_prefetch = 0 : i64, scratch_operands = 0 : i64, tpu.core_type = #tpu.core_type<tc>, window_params = [{transform_indices = @transform_0, window_bounds = array<i64: 8, 256>}, {pipeline_mode = #tpu.pipeline_mode<synchronous>, transform_indices = @transform_1, window_bounds = array<i64: 256, 512>}, {pipeline_mode = #tpu.pipeline_mode<synchronous>, transform_indices = @transform_2, window_bounds = array<i64: 1, 512>}, {pipeline_mode = #tpu.pipeline_mode<synchronous>, transform_indices = @transform_3, window_bounds = array<i64: 1, 512>}, {pipeline_mode = #tpu.pipeline_mode<synchronous>, transform_indices = @transform_4, window_bounds = array<i64: 512, 768>}, {pipeline_mode = #tpu.pipeline_mode<synchronous>, transform_indices = @transform_5, window_bounds = array<i64: 1, 768>}, {pipeline_mode = #tpu.pipeline_mode<synchronous>, transform_indices = @transform_6, window_bounds = array<i64: 1, 768>}, {pipeline_mode = #tpu.pipeline_mode<synchronous>, transform_indices = @transform_7, window_bounds = array<i64: 768, 128>}, {pipeline_mode = #tpu.pipeline_mode<synchronous>, transform_indices = @transform_8, window_bounds = array<i64: 1, 128>}, {transform_indices = @transform_9, window_bounds = array<i64: 8, 128>}]} {
    %c0 = arith.constant 0 : index
    %c0_0 = arith.constant 0 : index
    %0 = vector.load %arg1[%c0, %c0_0] : memref<8x256xbf16, #tpu.memory_space<vmem>>, vector<8x256xbf16>
    %cst = arith.constant 0.000000e+00 : bf16
    %1 = vector.broadcast %cst : bf16 to vector<8x256xbf16>
    %2 = arith.maximumf %0, %1 : vector<8x256xbf16>
    %c0_1 = arith.constant 0 : index
    %c0_2 = arith.constant 0 : index
    %3 = vector.load %arg2[%c0_1, %c0_2] : memref<256x512xbf16, #tpu.memory_space<vmem>>, vector<256x512xbf16>
    %cst_3 = arith.constant dense<0.000000e+00> : vector<8x512xf32>
    %4 = tpu.matmul %2, %3, %cst_3 {dimension_numbers = #tpu.dot_dimension_numbers<[1], [0], [0], [1], [0, 0, 1, 1], [], []>} : vector<8x256xbf16>, vector<256x512xbf16>, vector<8x512xf32> -> vector<8x512xf32>
    %c0_4 = arith.constant 0 : index
    %c0_5 = arith.constant 0 : index
    %5 = vector.load %arg3[%c0_4, %c0_5] : memref<1x512xf32, #tpu.memory_space<vmem>>, vector<1x512xf32>
    %6 = vector.broadcast %5 : vector<1x512xf32> to vector<8x512xf32>
    %7 = arith.mulf %4, %6 : vector<8x512xf32>
    %c0_6 = arith.constant 0 : index
    %c0_7 = arith.constant 0 : index
    %8 = vector.load %arg4[%c0_6, %c0_7] : memref<1x512xf32, #tpu.memory_space<vmem>>, vector<1x512xf32>
    %9 = vector.broadcast %8 : vector<1x512xf32> to vector<8x512xf32>
    %10 = arith.addf %7, %9 : vector<8x512xf32>
    %cst_8 = arith.constant 0.000000e+00 : f32
    %11 = vector.broadcast %cst_8 : f32 to vector<8x512xf32>
    %12 = arith.maximumf %10, %11 : vector<8x512xf32>
    %13 = arith.truncf %12 : vector<8x512xf32> to vector<8x512xbf16>
    %c0_9 = arith.constant 0 : index
    %c0_10 = arith.constant 0 : index
    %14 = vector.load %arg5[%c0_9, %c0_10] : memref<512x768xbf16, #tpu.memory_space<vmem>>, vector<512x768xbf16>
    %cst_11 = arith.constant dense<0.000000e+00> : vector<8x768xf32>
    %15 = tpu.matmul %13, %14, %cst_11 {dimension_numbers = #tpu.dot_dimension_numbers<[1], [0], [0], [1], [0, 0, 1, 1], [], []>} : vector<8x512xbf16>, vector<512x768xbf16>, vector<8x768xf32> -> vector<8x768xf32>
    %c0_12 = arith.constant 0 : index
    %c0_13 = arith.constant 0 : index
    %16 = vector.load %arg6[%c0_12, %c0_13] : memref<1x768xf32, #tpu.memory_space<vmem>>, vector<1x768xf32>
    %17 = vector.broadcast %16 : vector<1x768xf32> to vector<8x768xf32>
    %18 = arith.mulf %15, %17 : vector<8x768xf32>
    %c0_14 = arith.constant 0 : index
    %c0_15 = arith.constant 0 : index
    %19 = vector.load %arg7[%c0_14, %c0_15] : memref<1x768xf32, #tpu.memory_space<vmem>>, vector<1x768xf32>
    %20 = vector.broadcast %19 : vector<1x768xf32> to vector<8x768xf32>
    %21 = arith.addf %18, %20 : vector<8x768xf32>
    %cst_16 = arith.constant 0.000000e+00 : f32
    %22 = vector.broadcast %cst_16 : f32 to vector<8x768xf32>
    %23 = arith.maximumf %21, %22 : vector<8x768xf32>
    %24 = arith.truncf %23 : vector<8x768xf32> to vector<8x768xbf16>
    %c0_17 = arith.constant 0 : index
    %c0_18 = arith.constant 0 : index
    %25 = vector.load %arg8[%c0_17, %c0_18] : memref<768x128xbf16, #tpu.memory_space<vmem>>, vector<768x128xbf16>
    %cst_19 = arith.constant dense<0.000000e+00> : vector<8x128xf32>
    %26 = tpu.matmul %24, %25, %cst_19 {dimension_numbers = #tpu.dot_dimension_numbers<[1], [0], [0], [1], [0, 0, 1, 1], [], []>} : vector<8x768xbf16>, vector<768x128xbf16>, vector<8x128xf32> -> vector<8x128xf32>
    %c0_20 = arith.constant 0 : index
    %c0_21 = arith.constant 0 : index
    %27 = vector.load %arg9[%c0_20, %c0_21] : memref<1x128xf32, #tpu.memory_space<vmem>>, vector<1x128xf32>
    %28 = vector.broadcast %27 : vector<1x128xf32> to vector<8x128xf32>
    %29 = arith.addf %26, %28 : vector<8x128xf32>
    %c0_22 = arith.constant 0 : index
    %c0_23 = arith.constant 0 : index
    %30 = vector.load %arg10[%c0_22, %c0_23] : memref<8x128xf32, #tpu.memory_space<vmem>>, vector<8x128xf32>
    tpu.vector_store %arg10[%c0_22, %c0_23], %29 {strides = array<i32>} : memref<8x128xf32, #tpu.memory_space<vmem>>, vector<8x128xf32>,
    return
  }
  func.func @transform_0(%arg0: i32) -> (i32, i32) {
    %c0_i32 = arith.constant 0 : i32
    %c0_i32_0 = arith.constant 0 : i32
    return %arg0, %c0_i32 : i32, i32
  }
  func.func @transform_1(%arg0: i32) -> (i32, i32) {
    %c0_i32 = arith.constant 0 : i32
    %c0_i32_0 = arith.constant 0 : i32
    %c0_i32_1 = arith.constant 0 : i32
    return %c0_i32, %c0_i32_0 : i32, i32
  }
  func.func @transform_2(%arg0: i32) -> (i32, i32) {
    %c0_i32 = arith.constant 0 : i32
    %c0_i32_0 = arith.constant 0 : i32
    %c0_i32_1 = arith.constant 0 : i32
    return %c0_i32, %c0_i32_0 : i32, i32
  }
  func.func @transform_3(%arg0: i32) -> (i32, i32) {
    %c0_i32 = arith.constant 0 : i32
    %c0_i32_0 = arith.constant 0 : i32
    %c0_i32_1 = arith.constant 0 : i32
    return %c0_i32, %c0_i32_0 : i32, i32
  }
  func.func @transform_4(%arg0: i32) -> (i32, i32) {
    %c0_i32 = arith.constant 0 : i32
    %c0_i32_0 = arith.constant 0 : i32
    %c0_i32_1 = arith.constant 0 : i32
    return %c0_i32, %c0_i32_0 : i32, i32
  }
  func.func @transform_5(%arg0: i32) -> (i32, i32) {
    %c0_i32 = arith.constant 0 : i32
    %c0_i32_0 = arith.constant 0 : i32
    %c0_i32_1 = arith.constant 0 : i32
    return %c0_i32, %c0_i32_0 : i32, i32
  }
  func.func @transform_6(%arg0: i32) -> (i32, i32) {
    %c0_i32 = arith.constant 0 : i32
    %c0_i32_0 = arith.constant 0 : i32
    %c0_i32_1 = arith.constant 0 : i32
    return %c0_i32, %c0_i32_0 : i32, i32
  }
  func.func @transform_7(%arg0: i32) -> (i32, i32) {
    %c0_i32 = arith.constant 0 : i32
    %c0_i32_0 = arith.constant 0 : i32
    %c0_i32_1 = arith.constant 0 : i32
    return %c0_i32, %c0_i32_0 : i32, i32
  }
  func.func @transform_8(%arg0: i32) -> (i32, i32) {
    %c0_i32 = arith.constant 0 : i32
    %c0_i32_0 = arith.constant 0 : i32
    %c0_i32_1 = arith.constant 0 : i32
    return %c0_i32, %c0_i32_0 : i32, i32
  }
  func.func @transform_9(%arg0: i32) -> (i32, i32) {
    %c0_i32 = arith.constant 0 : i32
    %c0_i32_0 = arith.constant 0 : i32
    return %arg0, %c0_i32 : i32, i32
  }
}

</mosaic_0001>

<bundles_post_ra>
// kernel: tpu_custom_call.1
= control target key start
LH: loop header
LB: loop body
LE: loop exit
PB: predicated region body
PF: predicated region fallthrough
CT: control target
= control target key end

     0   :  { %14 = vsyncpa [#allocation3], 0  ;;  %s4626_s0 = inlined_call_operand.hbm [shape: bf16[8,256], index: 0, kind: input, shape index: {}]   ;;  %s4627_s1 = inlined_call_operand.hbm [shape: bf16[256,512], index: 1, kind: input, shape index: {}]   ;;  %s4628_s2 = inlined_call_operand.hbm [shape: f32[1,512], index: 2, kind: input, shape index: {}]   ;;  %s4629_s3 = inlined_call_operand.hbm [shape: f32[1,512], index: 3, kind: input, shape index: {}]   ;;  %s4630_s4 = inlined_call_operand.hbm [shape: bf16[512,768], index: 4, kind: input, shape index: {}]   ;;  %s4631_s5 = inlined_call_operand.hbm [shape: f32[1,768], index: 5, kind: input, shape index: {}]   ;;  %s4632_s6 = inlined_call_operand.hbm [shape: f32[1,768], index: 6, kind: input, shape index: {}]   ;;  %s4633_s7 = inlined_call_operand.hbm [shape: bf16[768,128], index: 7, kind: input, shape index: {}]   ;;  %s4634_s8 = inlined_call_operand.vmem [shape: f32[1,128], index: 8, kind: input, shape index: {}]   ;;  %s4635_s9 = inlined_call_operand.hbm [shape: f32[8,128], index: 9, kind: output, shape index: {}]  }
   0x1   :  { %15 = vsyncpa [#allocation6], 0 }
   0x2   :  { %16 = vsyncpa [#allocation9], 0 }
   0x3   :  { %17 = vsyncpa [#allocation12], 0 }
   0x4   :  { %18 = vsyncpa [#allocation15], 0  ;;  %s35_s11 = sshll.u32 %s4627_s1, 4  ;;  %s36_s11 = int_to_ptr.hbm [resolvable:$true] %s35_s11 }
   0x5   :  { %19 = vsyncpa [#allocation4], 0  ;;  %s4447_s12 = smov [#allocation5]   ;;  %s60_s16 = sshll.u32 %s4629_s3, 4  ;;  %s61_s16 = int_to_ptr.hbm [resolvable:$true] %s60_s16 }
   0x6   :  { %s37_s13 = sshll.u32 %s4447_s12, 4  ;;  %s4448_s17 = smov 256   ;;  %s38_s13 = int_to_ptr.vmem [resolvable:$true] %s37_s13 }
   0x7   :  { %s4449_s18 = smov 16   ;;  %s4450_s19 = smov [#allocation8]  }
   0x8   :  { %43 = dma.hbm_to_vmem [thread:$0]  %s36_s11, 8192, %s38_s13, [#allocation6], %s4448_s17, %s4448_s17, %s4449_s18  }
   0x9   :  { %s62_s20 = sshll.u32 %s4450_s19, 4  ;;  %s84_s23 = sshll.u32 %s4631_s5, 4  ;;  %s63_s20 = int_to_ptr.vmem [resolvable:$true] %s62_s20  ;;  %s85_s23 = int_to_ptr.hbm [resolvable:$true] %s84_s23 }
   0xa   :  { %65 = dma.hbm_to_vmem [thread:$0]  %s61_s16, 64, %s63_s20, [#allocation9]  }
   0xb   :  { %s25_s25 = sshll.u32 %s4626_s0, 4  ;;  %s4451_s26 = smov [#allocation11]   ;;  %s26_s25 = int_to_ptr.hbm [resolvable:$true] %s25_s25 }
   0xc   :  { %s86_s27 = sshll.u32 %s4451_s26, 4  ;;  %s4452_s3 = smov [#allocation2]   ;;  %s87_s27 = int_to_ptr.vmem [resolvable:$true] %s86_s27 }
   0xd   :  { %89 = dma.hbm_to_vmem [thread:$0]  %s85_s23, 96, %s87_s27, [#allocation12]  }
   0xe   :  { %s27_s28 = sshll.u32 %s4452_s3, 4  ;;  %s49_s10 = sshll.u32 %s4628_s2, 4  ;;  %s28_s28 = int_to_ptr.vmem [resolvable:$true] %s27_s28  ;;  %s50_s10 = int_to_ptr.hbm [resolvable:$true] %s49_s10 }
   0xf   :  { %30 = dma.hbm_to_vmem [thread:$0]  %s26_s25, 128, %s28_s28, [#allocation3]  }
  0x10   :  { %s70_s12 = sshll.u32 %s4630_s4, 4  ;;  %s4453_s13 = smov [#allocation7]   ;;  %s71_s12 = int_to_ptr.hbm [resolvable:$true] %s70_s12 }
  0x11   :  { %s51_s0 = sshll.u32 %s4453_s13, 4  ;;  %s4454_s14 = smov [#allocation10]   ;;  %s52_s0 = int_to_ptr.vmem [resolvable:$true] %s51_s0 }
  0x12   :  { %54 = dma.hbm_to_vmem [thread:$0]  %s50_s10, 64, %s52_s0, [#allocation6]  }
  0x13   :  { %s72_s15 = sshll.u32 %s4454_s14, 4  ;;  %s4455_s16 = smov 384   ;;  %s73_s15 = int_to_ptr.vmem [resolvable:$true] %s72_s15 }
  0x14   :  { %s4456_s17 = smov 24   ;;  %s95_s19 = sshll.u32 %s4632_s6, 4  ;;  %s96_s19 = int_to_ptr.hbm [resolvable:$true] %s95_s19 }
  0x15   :  { %78 = dma.hbm_to_vmem [thread:$0]  %s71_s12, 24576, %s73_s15, [#allocation9], %s4455_s16, %s4455_s16, %s4456_s17  }
  0x16   :  { %s4457_s20 = smov [#allocation13]   ;;  %s105_s23 = sshll.u32 %s4633_s7, 4  ;;  %s106_s23 = int_to_ptr.hbm [resolvable:$true] %s105_s23 }
  0x17   :  { %s97_s21 = sshll.u32 %s4457_s20, 4  ;;  %s4458_s1 = smov [#allocation14]   ;;  %s98_s21 = int_to_ptr.vmem [resolvable:$true] %s97_s21 }
  0x18   :  { %100 = dma.hbm_to_vmem [thread:$0]  %s96_s19, 96, %s98_s21, [#allocation12]  }
  0x19   :  { %s107_s24 = sshll.u32 %s4458_s1, 4  ;;  %s4459_s25 = smov 64   ;;  %s108_s24 = int_to_ptr.vmem [resolvable:$true] %s107_s24 }
  0x1a   :  { %s4460_s26 = smov 4  }
  0x1b   :  { %113 = dma.hbm_to_vmem [thread:$0]  %s106_s23, 6144, %s108_s24, [#allocation15], %s4459_s25, %s4459_s25, %s4460_s26  }
  0x1c   :  { %4435 = dma.done.wait [#allocation3], 128  }
  0x1d   :  { %4436 = vsyncadd [#allocation3], 4294967168 }
  0x1e   :  { %4437 = dma.done.wait [#allocation6], 8256  }
  0x1f   :  { %4438 = vsyncadd [#allocation6], 4294959040 }
  0x20   :  { %4439 = dma.done.wait [#allocation9], 24640  }
  0x21   :  { %4440 = vsyncadd [#allocation9], 4294942656 }
  0x22   :  { %4441 = dma.done.wait [#allocation12], 192  }
  0x23   :  { %4442 = vsyncadd [#allocation12], 4294967104 }
  0x24   :  { %4443 = dma.done.wait [#allocation15], 6144  }
  0x25   :  { %4444 = vsyncadd [#allocation15], 4294961152  ;;  %v2797_v0 = vld [vmem:[#allocation5 + $0xe0] sm:$0xf]  ;;  %v3929_v1 = vld [vmem:[#allocation5 + $0xec] sm:$0xf0] }
  0x26   :  { %v2925_v2 = vld [vmem:[#allocation5 + $0x1e0] sm:$0xf]  ;;  %v2798_v3 = vor.u32 %v3929_v1, %v2797_v0  ;;  %v3961_v4 = vld [vmem:[#allocation5 + $0x1ec] sm:$0xf0]  ;;  %v3927_v5 = vld [vmem:[#allocation5 + $0xe4] sm:$0xf] }
  0x27   :  { %v2799_v6 = vld [vmem:[#allocation5 + $0xf0] sm:$0xf0]  ;;  %v2926_v7 = vor.u32 %v3961_v4, %v2925_v2  ;;  %v3959_v9 = vld [vmem:[#allocation5 + $0x1e4] sm:$0xf]  ;;  %v2781_v11 = vld [vmem:[#allocation5 + $0xc0] sm:$0xf] }
  0x28   :  { %v2802_v8 = vor.u32 %v3927_v5, %v2799_v6  ;;  %v2927_v10 = vld [vmem:[#allocation5 + $0x1f0] sm:$0xf0]  ;;  %539 = vmatpush.bf16.msra.mxu0 %v2798_v3  ;;  %v3925_v13 = vld [vmem:[#allocation5 + $0xcc] sm:$0xf0]  ;;  %v2909_v14 = vld [vmem:[#allocation5 + $0x1c0] sm:$0xf] }
  0x29   :  { %v2930_v12 = vor.u32 %v3959_v9, %v2927_v10  ;;  %v3957_v15 = vld [vmem:[#allocation5 + $0x1cc] sm:$0xf0]  ;;  %552 = vmatpush.bf16.msra.mxu1 %v2926_v7  ;;  %v2782_v16 = vor.u32 %v3925_v13, %v2781_v11  ;;  %v3923_v18 = vld [vmem:[#allocation5 + $0xc4] sm:$0xf]  ;;  %v2783_v19 = vld [vmem:[#allocation5 + $0xd0] sm:$0xf0] }
  0x2a   :  { %565 = vmatpush.bf16.msra.mxu2 %v2802_v8  ;;  %v2910_v17 = vor.u32 %v3957_v15, %v2909_v14  ;;  %v3955_v20 = vld [vmem:[#allocation5 + $0x1c4] sm:$0xf]  ;;  %v2786_v21 = vor.u32 %v3923_v18, %v2783_v19  ;;  %v2911_v22 = vld [vmem:[#allocation5 + $0x1d0] sm:$0xf0]  ;;  %v2765_v23 = vld [vmem:[#allocation5 + $0xa0] sm:$0xf] }
  0x2b   :  { %578 = vmatpush.bf16.msra.mxu3 %v2930_v12  ;;  %v3921_v24 = vld [vmem:[#allocation5 + $0xac] sm:$0xf0]  ;;  %v2914_v25 = vor.u32 %v3955_v20, %v2911_v22  ;;  %v2893_v26 = vld [vmem:[#allocation5 + $0x1a0] sm:$0xf]  ;;  %v3919_v28 = vld [vmem:[#allocation5 + $0xa4] sm:$0xf] }
  0x2c   :  { %v3953_v27 = vld [vmem:[#allocation5 + $0x1ac] sm:$0xf0]  ;;  %540 = vmatpush.bf16.msra.mxu0 %v2782_v16  ;;  %v2766_v29 = vor.u32 %v3921_v24, %v2765_v23  ;;  %v2767_v30 = vld [vmem:[#allocation5 + $0xb0] sm:$0xf0]  ;;  %v3951_v31 = vld [vmem:[#allocation5 + $0x1a4] sm:$0xf] }
  0x2d   :  { %v2895_v32 = vld [vmem:[#allocation5 + $0x1b0] sm:$0xf0]  ;;  %553 = vmatpush.bf16.msra.mxu1 %v2910_v17  ;;  %v2894_v33 = vor.u32 %v3953_v27, %v2893_v26  ;;  %v2770_v34 = vor.u32 %v3919_v28, %v2767_v30  ;;  %v2749_v35 = vld [vmem:[#allocation5 + $0x80] sm:$0xf]  ;;  %v3917_v36 = vld [vmem:[#allocation5 + $0x8c] sm:$0xf0] }
  0x2e   :  { %566 = vmatpush.bf16.msra.mxu2 %v2786_v21  ;;  %v2877_v37 = vld [vmem:[#allocation5 + $0x180] sm:$0xf]  ;;  %v2898_v38 = vor.u32 %v3951_v31, %v2895_v32  ;;  %v3949_v39 = vld [vmem:[#allocation5 + $0x18c] sm:$0xf0]  ;;  %v3915_v40 = vld [vmem:[#allocation5 + $0x84] sm:$0xf]  ;;  %v2750_v44 = vor.u32 %v3917_v36, %v2749_v35 }
  0x2f   :  { %579 = vmatpush.bf16.msra.mxu3 %v2914_v25  ;;  %v2751_v41 = vld [vmem:[#allocation5 + $0x90] sm:$0xf0]  ;;  %v3947_v42 = vld [vmem:[#allocation5 + $0x184] sm:$0xf]  ;;  %v2878_v45 = vor.u32 %v3949_v39, %v2877_v37  ;;  %v2733_v47 = vld [vmem:[#allocation5 + $0x60] sm:$0xf] }
  0x30   :  { %v2879_v43 = vld [vmem:[#allocation5 + $0x190] sm:$0xf0]  ;;  %541 = vmatpush.bf16.msra.mxu0 %v2766_v29  ;;  %v2754_v46 = vor.u32 %v3915_v40, %v2751_v41  ;;  %v3913_v48 = vld [vmem:[#allocation5 + $0x6c] sm:$0xf0]  ;;  %v2861_v49 = vld [vmem:[#allocation5 + $0x160] sm:$0xf] }
  0x31   :  { %554 = vmatpush.bf16.msra.mxu1 %v2894_v33  ;;  %v2882_v50 = vor.u32 %v3947_v42, %v2879_v43  ;;  %v3945_v51 = vld [vmem:[#allocation5 + $0x16c] sm:$0xf0]  ;;  %v3911_v52 = vld [vmem:[#allocation5 + $0x64] sm:$0xf]  ;;  %v2735_v53 = vld [vmem:[#allocation5 + $0x70] sm:$0xf0]  ;;  %v2734_v56 = vor.u32 %v3913_v48, %v2733_v47 }
  0x32   :  { %567 = vmatpush.bf16.msra.mxu2 %v2770_v34  ;;  %v3943_v54 = vld [vmem:[#allocation5 + $0x164] sm:$0xf]  ;;  %v2863_v55 = vld [vmem:[#allocation5 + $0x170] sm:$0xf0]  ;;  %v2862_v57 = vor.u32 %v3945_v51, %v2861_v49  ;;  %v2738_v58 = vor.u32 %v3911_v52, %v2735_v53  ;;  %v2717_v59 = vld [vmem:[#allocation5 + $0x40] sm:$0xf] }
  0x33   :  { %580 = vmatpush.bf16.msra.mxu3 %v2898_v38  ;;  %v3909_v60 = vld [vmem:[#allocation5 + $0x4c] sm:$0xf0]  ;;  %v2845_v61 = vld [vmem:[#allocation5 + $0x140] sm:$0xf]  ;;  %v2866_v62 = vor.u32 %v3943_v54, %v2863_v55  ;;  %v3907_v0 = vld [vmem:[#allocation5 + $0x44] sm:$0xf] }
  0x34   :  { %542 = vmatpush.bf16.msra.mxu0 %v2750_v44  ;;  %v3941_v63 = vld [vmem:[#allocation5 + $0x14c] sm:$0xf0]  ;;  %v2719_v1 = vld [vmem:[#allocation5 + $0x50] sm:$0xf0]  ;;  %v3939_v2 = vld [vmem:[#allocation5 + $0x144] sm:$0xf]  ;;  %v2718_v4 = vor.u32 %v3909_v60, %v2717_v59 }
  0x35   :  { %555 = vmatpush.bf16.msra.mxu1 %v2878_v45  ;;  %v2847_v3 = vld [vmem:[#allocation5 + $0x150] sm:$0xf0]  ;;  %v2846_v5 = vor.u32 %v3941_v63, %v2845_v61  ;;  %v2722_v6 = vor.u32 %v3907_v0, %v2719_v1  ;;  %v2701_v7 = vld [vmem:[#allocation5 + $0x20] sm:$0xf]  ;;  %v3905_v8 = vld [vmem:[#allocation5 + $0x2c] sm:$0xf0] }
  0x36   :  { %568 = vmatpush.bf16.msra.mxu2 %v2754_v46  ;;  %v2829_v9 = vld [vmem:[#allocation5 + $0x120] sm:$0xf]  ;;  %v2850_v10 = vor.u32 %v3939_v2, %v2847_v3  ;;  %v3937_v11 = vld [vmem:[#allocation5 + $0x12c] sm:$0xf0]  ;;  %v3903_v12 = vld [vmem:[#allocation5 + $0x24] sm:$0xf]  ;;  %v2702_v17 = vor.u32 %v3905_v8, %v2701_v7 }
  0x37   :  { %581 = vmatpush.bf16.msra.mxu3 %v2882_v50  ;;  %v2703_v13 = vld [vmem:[#allocation5 + $0x30] sm:$0xf0]  ;;  %v3935_v14 = vld [vmem:[#allocation5 + $0x124] sm:$0xf]  ;;  %v2685_v16 = vld [vmem:[#allocation5] sm:$0xf]  ;;  %v2830_v21 = vor.u32 %v3937_v11, %v2829_v9 }
  0x38   :  { %543 = vmatpush.bf16.msra.mxu0 %v2734_v56  ;;  %v2831_v15 = vld [vmem:[#allocation5 + $0x130] sm:$0xf0]  ;;  %v3901_v18 = vld [vmem:[#allocation5 + $0xc] sm:$0xf0]  ;;  %v2813_v19 = vld [vmem:[#allocation5 + $0x100] sm:$0xf]  ;;  %v2706_v22 = vor.u32 %v3903_v12, %v2703_v13 }
  0x39   :  { %556 = vmatpush.bf16.msra.mxu1 %v2862_v57  ;;  %v3933_v20 = vld [vmem:[#allocation5 + $0x10c] sm:$0xf0]  ;;  %v3899_v23 = vld [vmem:[#allocation5 + $0x4] sm:$0xf]  ;;  %v2687_v24 = vld [vmem:[#allocation5 + $0x10] sm:$0xf0]  ;;  %v2834_v26 = vor.u32 %v3935_v14, %v2831_v15  ;;  %v2686_v35 = vor.u32 %v3901_v18, %v2685_v16 }
  0x3a   :  { %569 = vmatpush.bf16.msra.mxu2 %v2738_v58  ;;  %v148_v25 = vld [vmem:[#allocation2] sm:$0xff]  ;;  %v3931_v27 = vld [vmem:[#allocation5 + $0x104] sm:$0xf]  ;;  %v2815_v28 = vld [vmem:[#allocation5 + $0x110] sm:$0xf0]  ;;  %v2814_v39 = vor.u32 %v3933_v20, %v2813_v19  ;;  %v2690_v40 = vor.u32 %v3899_v23, %v2687_v24  ;;  %s4461_s27 = smov [#allocation16]  }
  0x3b   :  { %582 = vmatpush.bf16.msra.mxu3 %v2866_v62  ;;  %v2805_v29 = vld [vmem:[#allocation5 + $0xe8] sm:$0xf]  ;;  %v149_v30 = vunpack.c.l.bf16 %v148_v25  ;;  %v150_v31 = vunpack.c.h.bf16 %v148_v25  ;;  %v3930_v32 = vld [vmem:[#allocation5 + $0xf4] sm:$0xf0]  ;;  %v3928_v36 = vld [vmem:[#allocation5 + $0xec] sm:$0xf]  ;;  %v2818_v44 = vor.u32 %v3931_v27, %v2815_v28 }
  0x3c   :  { %544 = vmatpush.bf16.msra.mxu0 %v2718_v4  ;;  %v2933_v33 = vld [vmem:[#allocation5 + $0x1e8] sm:$0xf]  ;;  %v3962_v34 = vld [vmem:[#allocation5 + $0x1f4] sm:$0xf0]  ;;  %v2807_v37 = vld [vmem:[#allocation5 + $0xf8] sm:$0xf0]  ;;  %v2806_v45 = vor.u32 %v3930_v32, %v2805_v29 }
  0x3d   :  { %557 = vmatpush.bf16.msra.mxu1 %v2846_v5  ;;  %v151_v38 = vmax.f32 %v149_v30, 0.0  ;;  %v3960_v41 = vld [vmem:[#allocation5 + $0x1ec] sm:$0xf]  ;;  %v2935_v42 = vld [vmem:[#allocation5 + $0x1f8] sm:$0xf0]  ;;  %v152_v43 = vmax.f32 %v150_v31, 0.0  ;;  %v2934_v46 = vor.u32 %v3962_v34, %v2933_v33  ;;  %v2810_v47 = vor.u32 %v3928_v36, %v2807_v37 }
  0x3e   :  { %570 = vmatpush.bf16.msra.mxu2 %v2722_v6  ;;  %v2789_v48 = vld [vmem:[#allocation5 + $0xc8] sm:$0xf]  ;;  %v3926_v49 = vld [vmem:[#allocation5 + $0xd4] sm:$0xf0]  ;;  %v2938_v51 = vor.u32 %v3960_v41, %v2935_v42  ;;  %v3924_v54 = vld [vmem:[#allocation5 + $0xcc] sm:$0xf] }
  0x3f   :  { %583 = vmatpush.bf16.msra.mxu3 %v2850_v10  ;;  %v2917_v50 = vld [vmem:[#allocation5 + $0x1c8] sm:$0xf]  ;;  %v4536_v52 = vpack.c.bf16 %v151_v38, %v151_v38  ;;  %v3958_v53 = vld [vmem:[#allocation5 + $0x1d4] sm:$0xf0]  ;;  %v2791_v55 = vld [vmem:[#allocation5 + $0xd8] sm:$0xf0]  ;;  %v4538_v56 = vpack.c.bf16 %v152_v43, %v152_v43  ;;  %v2790_v59 = vor.u32 %v3926_v49, %v2789_v48 }
  0x40   :  { %545 = vmatpush.bf16.msra.mxu0 %v2702_v17  ;;  %v3956_v57 = vld [vmem:[#allocation5 + $0x1cc] sm:$0xf]  ;;  %v2919_v58 = vld [vmem:[#allocation5 + $0x1d8] sm:$0xf0]  ;;  %v2918_v60 = vor.u32 %v3958_v53, %v2917_v50  ;;  %v2794_v61 = vor.u32 %v3924_v54, %v2791_v55  ;;  %v2773_v62 = vld [vmem:[#allocation5 + $0xa8] sm:$0xf] }
  0x41   :  { %558 = vmatpush.bf16.msra.mxu1 %v2830_v21  ;;  %v3922_v63 = vld [vmem:[#allocation5 + $0xb4] sm:$0xf0]  ;;  %v2901_v0 = vld [vmem:[#allocation5 + $0x1a8] sm:$0xf]  ;;  %v2922_v1 = vor.u32 %v3956_v57, %v2919_v58  ;;  %v3920_v3 = vld [vmem:[#allocation5 + $0xac] sm:$0xf] }
  0x42   :  { %571 = vmatpush.bf16.msra.mxu2 %v2706_v22  ;;  %v3954_v2 = vld [vmem:[#allocation5 + $0x1b4] sm:$0xf0]  ;;  %v2775_v4 = vld [vmem:[#allocation5 + $0xb8] sm:$0xf0]  ;;  %v3952_v5 = vld [vmem:[#allocation5 + $0x1ac] sm:$0xf]  ;;  %v2774_v7 = vor.u32 %v3922_v63, %v2773_v62 }
  0x43   :  { %584 = vmatpush.bf16.msra.mxu3 %v2834_v26  ;;  %v2903_v6 = vld [vmem:[#allocation5 + $0x1b8] sm:$0xf0]  ;;  %v2902_v8 = vor.u32 %v3954_v2, %v2901_v0  ;;  %v2778_v9 = vor.u32 %v3920_v3, %v2775_v4  ;;  %v2757_v10 = vld [vmem:[#allocation5 + $0x88] sm:$0xf]  ;;  %v3918_v11 = vld [vmem:[#allocation5 + $0x94] sm:$0xf0] }
  0x44   :  { %546 = vmatpush.bf16.msra.mxu0 %v2686_v35  ;;  %v2885_v12 = vld [vmem:[#allocation5 + $0x188] sm:$0xf]  ;;  %v2906_v13 = vor.u32 %v3952_v5, %v2903_v6  ;;  %v3950_v14 = vld [vmem:[#allocation5 + $0x194] sm:$0xf0]  ;;  %v3916_v15 = vld [vmem:[#allocation5 + $0x8c] sm:$0xf]  ;;  %v2758_v19 = vor.u32 %v3918_v11, %v2757_v10 }
  0x45   :  { %559 = vmatpush.bf16.msra.mxu1 %v2814_v39  ;;  %v2759_v16 = vld [vmem:[#allocation5 + $0x98] sm:$0xf0]  ;;  %v3948_v17 = vld [vmem:[#allocation5 + $0x18c] sm:$0xf]  ;;  %v2886_v20 = vor.u32 %v3950_v14, %v2885_v12  ;;  %v2741_v22 = vld [vmem:[#allocation5 + $0x68] sm:$0xf] }
  0x46   :  { %572 = vmatpush.bf16.msra.mxu2 %v2690_v40  ;;  %v2887_v18 = vld [vmem:[#allocation5 + $0x198] sm:$0xf0]  ;;  %v2762_v21 = vor.u32 %v3916_v15, %v2759_v16  ;;  %v3914_v23 = vld [vmem:[#allocation5 + $0x74] sm:$0xf0]  ;;  %v2869_v24 = vld [vmem:[#allocation5 + $0x168] sm:$0xf] }
  0x47   :  { %585 = vmatpush.bf16.msra.mxu3 %v2818_v44  ;;  %547 = vmatmul.bf16.vlgmr.msra.gmra.mxu0 %v4536_v52  ;;  %v2890_v25 = vor.u32 %v3948_v17, %v2887_v18  ;;  %v3946_v26 = vld [vmem:[#allocation5 + $0x174] sm:$0xf0]  ;;  %v3912_v27 = vld [vmem:[#allocation5 + $0x6c] sm:$0xf]  ;;  %v2743_v28 = vld [vmem:[#allocation5 + $0x78] sm:$0xf0]  ;;  %v2742_v31 = vor.u32 %v3914_v23, %v2741_v22 }
  0x48   :  { %591 = vmatpush.bf16.msrb.mxu0 %v2806_v45  ;;  %560 = vmatmul.bf16.vlgmr.msra.gmra.mxu1 %v4538_v56  ;;  %v3944_v29 = vld [vmem:[#allocation5 + $0x16c] sm:$0xf]  ;;  %v2871_v30 = vld [vmem:[#allocation5 + $0x178] sm:$0xf0]  ;;  %v2870_v32 = vor.u32 %v3946_v26, %v2869_v24  ;;  %v2746_v33 = vor.u32 %v3912_v27, %v2743_v28  ;;  %v2725_v34 = vld [vmem:[#allocation5 + $0x48] sm:$0xf] }
  0x49   :  { %604 = vmatpush.bf16.msrb.mxu1 %v2934_v46  ;;  %573 = vmatmul.bf16.vlgmr.msra.gmra.mxu2 %v4536_v52  ;;  %v3910_v35 = vld [vmem:[#allocation5 + $0x54] sm:$0xf0]  ;;  %v2853_v36 = vld [vmem:[#allocation5 + $0x148] sm:$0xf]  ;;  %v2874_v37 = vor.u32 %v3944_v29, %v2871_v30  ;;  %v3908_v39 = vld [vmem:[#allocation5 + $0x4c] sm:$0xf] }
  0x4a   :  { %617 = vmatpush.bf16.msrb.mxu2 %v2810_v47  ;;  %586 = vmatmul.bf16.vlgmr.msra.gmra.mxu3 %v4538_v56  ;;  %v3942_v38 = vld [vmem:[#allocation5 + $0x154] sm:$0xf0]  ;;  %v2727_v40 = vld [vmem:[#allocation5 + $0x58] sm:$0xf0]  ;;  %v3940_v41 = vld [vmem:[#allocation5 + $0x14c] sm:$0xf]  ;;  %v2726_v43 = vor.u32 %v3910_v35, %v2725_v34 }
  0x4b   :  { %630 = vmatpush.bf16.msrb.mxu3 %v2938_v51  ;;  %v2855_v42 = vld [vmem:[#allocation5 + $0x158] sm:$0xf0]  ;;  %v2709_v44 = vld [vmem:[#allocation5 + $0x28] sm:$0xf]  ;;  %v2854_v45 = vor.u32 %v3942_v38, %v2853_v36  ;;  %v2730_v46 = vor.u32 %v3908_v39, %v2727_v40  ;;  %v3906_v47 = vld [vmem:[#allocation5 + $0x34] sm:$0xf0] }
  0x4c   :  { %592 = vmatpush.bf16.msrb.mxu0 %v2790_v59  ;;  %v2837_v48 = vld [vmem:[#allocation5 + $0x128] sm:$0xf]  ;;  %v2858_v49 = vor.u32 %v3940_v41, %v2855_v42  ;;  %v3938_v50 = vld [vmem:[#allocation5 + $0x134] sm:$0xf0]  ;;  %v3904_v51 = vld [vmem:[#allocation5 + $0x2c] sm:$0xf]  ;;  %v2710_v57 = vor.u32 %v3906_v47, %v2709_v44 }
  0x4d   :  { %605 = vmatpush.bf16.msrb.mxu1 %v2918_v60  ;;  %v2711_v53 = vld [vmem:[#allocation5 + $0x38] sm:$0xf0]  ;;  %v3936_v54 = vld [vmem:[#allocation5 + $0x12c] sm:$0xf]  ;;  %v2693_v58 = vld [vmem:[#allocation5 + $0x8] sm:$0xf]  ;;  %v2838_v59 = vor.u32 %v3938_v50, %v2837_v48 }
  0x4e   :  { %618 = vmatpush.bf16.msrb.mxu2 %v2794_v61  ;;  %v2839_v55 = vld [vmem:[#allocation5 + $0x138] sm:$0xf0]  ;;  %v2714_v60 = vor.u32 %v3904_v51, %v2711_v53  ;;  %v3902_v61 = vld [vmem:[#allocation5 + $0x14] sm:$0xf0]  ;;  %v2821_v62 = vld [vmem:[#allocation5 + $0x108] sm:$0xf] }
  0x4f   :  { %631 = vmatpush.bf16.msrb.mxu3 %v2922_v1  ;;  %v3934_v63 = vld [vmem:[#allocation5 + $0x114] sm:$0xf0]  ;;  %v2842_v0 = vor.u32 %v3936_v54, %v2839_v55  ;;  %v3900_v1 = vld [vmem:[#allocation5 + $0xc] sm:$0xf]  ;;  %v2695_v2 = vld [vmem:[#allocation5 + $0x18] sm:$0xf0] }
  0x50   :  { %593 = vmatpush.bf16.msrb.mxu0 %v2774_v7  ;;  %v3932_v3 = vld [vmem:[#allocation5 + $0x10c] sm:$0xf]  ;;  %v2823_v4 = vld [vmem:[#allocation5 + $0x118] sm:$0xf0]  ;;  %v3109_v5 = vld [vmem:[#allocation10 + $0x150] sm:$0xf]  ;;  %v2694_v7 = vor.u32 %v3902_v61, %v2693_v58  ;;  %v2822_v10 = vor.u32 %v3934_v63, %v2821_v62  ;;  %v2698_v11 = vor.u32 %v3900_v1, %v2695_v2 }
  0x51   :  { %606 = vmatpush.bf16.msrb.mxu1 %v2902_v8  ;;  %v4008_v6 = vld [vmem:[#allocation10 + $0x164] sm:$0xf0]  ;;  %v3301_v8 = vld [vmem:[#allocation10 + $0x2d0] sm:$0xf]  ;;  %v2826_v12 = vor.u32 %v3932_v3, %v2823_v4  ;;  %v3085_v16 = vld [vmem:[#allocation10 + $0x120] sm:$0xf] }
  0x52   :  { %619 = vmatpush.bf16.msrb.mxu2 %v2778_v9  ;;  %v4056_v9 = vld [vmem:[#allocation10 + $0x2e4] sm:$0xf0]  ;;  %v3493_v14 = vld [vmem:[#allocation10 + $0x450] sm:$0xf]  ;;  %v4002_v17 = vld [vmem:[#allocation10 + $0x134] sm:$0xf0] }
  0x53   :  { %632 = vmatpush.bf16.msrb.mxu3 %v2906_v13  ;;  %v3110_v13 = vor.u32 %v4008_v6, %v3109_v5  ;;  %v4104_v15 = vld [vmem:[#allocation10 + $0x464] sm:$0xf0]  ;;  %v3302_v18 = vor.u32 %v4056_v9, %v3301_v8  ;;  %v3086_v22 = vor.u32 %v4002_v17, %v3085_v16  ;;  %v3469_v23 = vld [vmem:[#allocation10 + $0x420] sm:$0xf]  ;;  %v4098_v24 = vld [vmem:[#allocation10 + $0x434] sm:$0xf0] }
  0x54   :  { %594 = vmatpush.bf16.msrb.mxu0 %v2758_v19  ;;  %v3277_v19 = vld [vmem:[#allocation10 + $0x2a0] sm:$0xf]  ;;  %v3996_v26 = vld [vmem:[#allocation10 + $0x104] sm:$0xf0]  ;;  %v3685_v28 = vld [vmem:[#allocation10 + $0x5d0] sm:$0xf] }
  0x55   :  { %607 = vmatpush.bf16.msrb.mxu1 %v2886_v20  ;;  %v4050_v20 = vld [vmem:[#allocation10 + $0x2b4] sm:$0xf0]  ;;  %v3253_v29 = vld [vmem:[#allocation10 + $0x270] sm:$0xf]  ;;  %v4044_v30 = vld [vmem:[#allocation10 + $0x284] sm:$0xf0] }
  0x56   :  { %620 = vmatpush.bf16.msrb.mxu2 %v2762_v21  ;;  %v3494_v21 = vor.u32 %v4104_v15, %v3493_v14  ;;  %v3278_v27 = vor.u32 %v4050_v20, %v3277_v19  ;;  %v3037_v35 = vld [vmem:[#allocation10 + $0xc0] sm:$0xf]  ;;  %v3445_v36 = vld [vmem:[#allocation10 + $0x3f0] sm:$0xf]  ;;  %v3990_v38 = vld [vmem:[#allocation10 + $0xd4] sm:$0xf0]  ;;  %v3254_v39 = vor.u32 %v4044_v30, %v3253_v29 }
  0x57   :  { %633 = vmatpush.bf16.msrb.mxu3 %v2890_v25  ;;  %v3061_v25 = vld [vmem:[#allocation10 + $0xf0] sm:$0xf]  ;;  %v3661_v40 = vld [vmem:[#allocation10 + $0x5a0] sm:$0xf]  ;;  %v4146_v41 = vld [vmem:[#allocation10 + $0x5b4] sm:$0xf0] }
  0x58   :  { %595 = vmatpush.bf16.msrb.mxu0 %v2742_v31  ;;  %v4152_v31 = vld [vmem:[#allocation10 + $0x5e4] sm:$0xf0]  ;;  %v3062_v34 = vor.u32 %v3996_v26, %v3061_v25  ;;  %v4038_v42 = vld [vmem:[#allocation10 + $0x254] sm:$0xf0]  ;;  %v3637_v50 = vld [vmem:[#allocation10 + $0x570] sm:$0xf] }
  0x59   :  { %608 = vmatpush.bf16.msrb.mxu1 %v2870_v32  ;;  %v3470_v32 = vor.u32 %v4098_v24, %v3469_v23  ;;  %v4086_v47 = vld [vmem:[#allocation10 + $0x3d4] sm:$0xf0]  ;;  %v3984_v48 = vld [vmem:[#allocation10 + $0xa4] sm:$0xf0]  ;;  %v3205_v53 = vld [vmem:[#allocation10 + $0x210] sm:$0xf] }
  0x5a   :  { %621 = vmatpush.bf16.msrb.mxu2 %v2746_v33  ;;  %v3686_v33 = vor.u32 %v4152_v31, %v3685_v28  ;;  %v4140_v51 = vld [vmem:[#allocation10 + $0x584] sm:$0xf0]  ;;  %v2989_v61 = vld [vmem:[#allocation10 + $0x60] sm:$0xf]  ;;  %v3978_v62 = vld [vmem:[#allocation10 + $0x74] sm:$0xf0] }
  0x5b   :  { %634 = vmatpush.bf16.msrb.mxu3 %v2874_v37  ;;  %v4092_v37 = vld [vmem:[#allocation10 + $0x404] sm:$0xf0]  ;;  %v3638_v55 = vor.u32 %v4140_v51, %v3637_v50  ;;  %v4026_v1 = vld [vmem:[#allocation10 + $0x1f4] sm:$0xf0]  ;;  %v2990_v3 = vor.u32 %v3978_v62, %v2989_v61  ;;  %v2965_v4 = vld [vmem:[#allocation10 + $0x30] sm:$0xf] }
  0x5c   :  { %596 = vmatpush.bf16.msrb.mxu0 %v2726_v43  ;;  %v3662_v43 = vor.u32 %v4146_v41, %v3661_v40  ;;  %v3446_v44 = vor.u32 %v4092_v37, %v3445_v36  ;;  %v4032_v54 = vld [vmem:[#allocation10 + $0x224] sm:$0xf0]  ;;  %v3111_v14 = vld [vmem:[#allocation10 + $0x168] sm:$0xf0]  ;;  %v3133_v15 = vld [vmem:[#allocation10 + $0x180] sm:$0xf] }
  0x5d   :  { %609 = vmatpush.bf16.msrb.mxu1 %v2854_v45  ;;  %v3013_v45 = vld [vmem:[#allocation10 + $0x90] sm:$0xf]  ;;  %v3206_v63 = vor.u32 %v4032_v54, %v3205_v53  ;;  %v3972_v5 = vld [vmem:[#allocation10 + $0x44] sm:$0xf0]  ;;  %v4014_v16 = vld [vmem:[#allocation10 + $0x194] sm:$0xf0] }
  0x5e   :  { %622 = vmatpush.bf16.msrb.mxu2 %v2730_v46  ;;  %v3421_v46 = vld [vmem:[#allocation10 + $0x3c0] sm:$0xf]  ;;  %v3014_v58 = vor.u32 %v3984_v48, %v3013_v45  ;;  %v4020_v8 = vld [vmem:[#allocation10 + $0x1c4] sm:$0xf0]  ;;  %v2966_v9 = vor.u32 %v3972_v5, %v2965_v4  ;;  %v4053_v17 = vld [vmem:[#allocation10 + $0x2d4] sm:$0xf] }
  0x5f   :  { %635 = vmatpush.bf16.msrb.mxu3 %v2858_v49  ;;  %v3087_v23 = vld [vmem:[#allocation10 + $0x138] sm:$0xf0]  ;;  %v4047_v25 = vld [vmem:[#allocation10 + $0x2a4] sm:$0xf]  ;;  %v3993_v28 = vld [vmem:[#allocation10 + $0xf4] sm:$0xf] }
  0x60   :  { %597 = vmatpush.bf16.msrb.mxu0 %v2710_v57  ;;  %v3422_v57 = vor.u32 %v4086_v47, %v3421_v46  ;;  %v3279_v26 = vld [vmem:[#allocation10 + $0x2b8] sm:$0xf0]  ;;  %v3063_v29 = vld [vmem:[#allocation10 + $0x108] sm:$0xf0]  ;;  %v4041_v31 = vld [vmem:[#allocation10 + $0x274] sm:$0xf] }
  0x61   :  { %610 = vmatpush.bf16.msrb.mxu1 %v2838_v59  ;;  %v3397_v59 = vld [vmem:[#allocation10 + $0x390] sm:$0xf]  ;;  %v3282_v30 = vor.u32 %v4047_v25, %v3279_v26  ;;  %v3613_v41 = vld [vmem:[#allocation10 + $0x540] sm:$0xf]  ;;  %v4074_v46 = vld [vmem:[#allocation10 + $0x374] sm:$0xf0] }
  0x62   :  { %623 = vmatpush.bf16.msrb.mxu2 %v2714_v60  ;;  %v4080_v60 = vld [vmem:[#allocation10 + $0x3a4] sm:$0xf0]  ;;  %v3373_v45 = vld [vmem:[#allocation10 + $0x360] sm:$0xf]  ;;  %v3975_v47 = vld [vmem:[#allocation10 + $0x64] sm:$0xf] }
  0x63   :  { %636 = vmatpush.bf16.msrb.mxu3 %v2842_v0  ;;  %v3181_v0 = vld [vmem:[#allocation10 + $0x1e0] sm:$0xf]  ;;  %v3398_v2 = vor.u32 %v4080_v60, %v3397_v59  ;;  %v3374_v48 = vor.u32 %v4074_v46, %v3373_v45  ;;  %v3589_v51 = vld [vmem:[#allocation10 + $0x510] sm:$0xf]  ;;  %v4128_v53 = vld [vmem:[#allocation10 + $0x524] sm:$0xf0] }
  0x64   :  { %598 = vmatpush.bf16.msrb.mxu0 %v2694_v7  ;;  %v3182_v6 = vor.u32 %v4026_v1, %v3181_v0  ;;  %v3157_v7 = vld [vmem:[#allocation10 + $0x1b0] sm:$0xf]  ;;  %v3590_v54 = vor.u32 %v4128_v53, %v3589_v51  ;;  %v4068_v60 = vld [vmem:[#allocation10 + $0x344] sm:$0xf0]  ;;  %v3969_v62 = vld [vmem:[#allocation10 + $0x34] sm:$0xf] }
  0x65   :  { %611 = vmatpush.bf16.msrb.mxu1 %v2822_v10  ;;  %v2941_v10 = vld [vmem:[#allocation10] sm:$0xf]  ;;  %v3349_v59 = vld [vmem:[#allocation10 + $0x330] sm:$0xf]  ;;  %v3183_v5 = vld [vmem:[#allocation10 + $0x1f8] sm:$0xf0] }
  0x66   :  { %624 = vmatpush.bf16.msrb.mxu2 %v2698_v11  ;;  %v3966_v11 = vld [vmem:[#allocation10 + $0x14] sm:$0xf0]  ;;  %v3350_v61 = vor.u32 %v4068_v60, %v3349_v59  ;;  %v3565_v1 = vld [vmem:[#allocation10 + $0x4e0] sm:$0xf]  ;;  %v3399_v45 = vld [vmem:[#allocation10 + $0x3a8] sm:$0xf0] }
  0x67   :  { %637 = vmatpush.bf16.msrb.mxu3 %v2826_v12  ;;  %599 = vmatmul.bf16.vlgmr.msrb.gmra.mxu0 %v4536_v52  ;;  %v4005_v12 = vld [vmem:[#allocation10 + $0x154] sm:$0xf]  ;;  %v2942_v19 = vor.u32 %v3966_v11, %v2941_v10  ;;  %v3963_v10 = vld [vmem:[#allocation10 + $0x4] sm:$0xf]  ;;  %v2943_v11 = vld [vmem:[#allocation10 + $0x18] sm:$0xf0] }
  0x68   :  { %1831 = vmatpush.bf16.msra.mxu0 %v3110_v13  ;;  %612 = vmatmul.bf16.vlgmr.msrb.gmra.mxu1 %v4538_v56  ;;  %v3158_v13 = vor.u32 %v4020_v8, %v3157_v7  ;;  %v3114_v20 = vor.u32 %v4005_v12, %v3111_v14  ;;  %v3325_v7 = vld [vmem:[#allocation10 + $0x300] sm:$0xf]  ;;  %v4062_v8 = vld [vmem:[#allocation10 + $0x314] sm:$0xf0]  ;;  %v4101_v12 = vld [vmem:[#allocation10 + $0x454] sm:$0xf] }
  0x69   :  { %1844 = vmatpush.bf16.msra.mxu1 %v3302_v18  ;;  %625 = vmatmul.bf16.vlgmr.msrb.gmra.mxu2 %v4536_v52  ;;  %v3229_v52 = vld [vmem:[#allocation10 + $0x240] sm:$0xf]  ;;  %v3303_v18 = vld [vmem:[#allocation10 + $0x2e8] sm:$0xf0]  ;;  %v4110_v26 = vld [vmem:[#allocation10 + $0x494] sm:$0xf0] }
  0x6a   :  { %638 = vmatmul.bf16.vlgmr.msrb.gmra.mxu3 %v4538_v56  ;;  %1857 = vmatpush.bf16.msra.mxu2 %v3494_v21  ;;  %v3038_v56 = vor.u32 %v3990_v38, %v3037_v35  ;;  %v3230_v49 = vor.u32 %v4038_v42, %v3229_v52  ;;  %v3134_v21 = vor.u32 %v4014_v16, %v3133_v15  ;;  %v3039_v35 = vld [vmem:[#allocation10 + $0xd8] sm:$0xf0]  ;;  %v3981_v38 = vld [vmem:[#allocation10 + $0x94] sm:$0xf]  ;;  %v4134_v52 = vld [vmem:[#allocation10 + $0x554] sm:$0xf0] }
  0x6b   :  { %1870 = vmatpush.bf16.msra.mxu3 %v3686_v33  ;;  %v3306_v24 = vor.u32 %v4053_v17, %v3303_v18  ;;  %v3066_v33 = vor.u32 %v3993_v28, %v3063_v29  ;;  %v4035_v42 = vld [vmem:[#allocation10 + $0x244] sm:$0xf]  ;;  %v3495_v14 = vld [vmem:[#allocation10 + $0x468] sm:$0xf0]  ;;  %v3541_v16 = vld [vmem:[#allocation10 + $0x4b0] sm:$0xf] }
  0x6c   :  { %1832 = vmatpush.bf16.msra.mxu0 %v3086_v22  ;;  %v3999_v22 = vld [vmem:[#allocation10 + $0x124] sm:$0xf]  ;;  %v3498_v15 = vor.u32 %v4101_v12, %v3495_v14  ;;  %v4116_v17 = vld [vmem:[#allocation10 + $0x4c4] sm:$0xf0]  ;;  %v3517_v25 = vld [vmem:[#allocation10 + $0x480] sm:$0xf] }
  0x6d   :  { %1845 = vmatpush.bf16.msra.mxu1 %v3278_v27  ;;  %v3090_v27 = vor.u32 %v3999_v22, %v3087_v23  ;;  %v3542_v18 = vor.u32 %v4116_v17, %v3541_v16  ;;  %v4095_v22 = vld [vmem:[#allocation10 + $0x424] sm:$0xf]  ;;  %v3471_v23 = vld [vmem:[#allocation10 + $0x438] sm:$0xf0]  ;;  %v4125_v60 = vld [vmem:[#allocation10 + $0x514] sm:$0xf] }
  0x6e   :  { %1858 = vmatpush.bf16.msra.mxu2 %v3470_v32  ;;  %v3255_v32 = vld [vmem:[#allocation10 + $0x288] sm:$0xf0]  ;;  %v4011_v28 = vld [vmem:[#allocation10 + $0x184] sm:$0xf]  ;;  %v3135_v29 = vld [vmem:[#allocation10 + $0x198] sm:$0xf0] }
  0x6f   :  { %1871 = vmatpush.bf16.msra.mxu3 %v3662_v43  ;;  %v3258_v36 = vor.u32 %v4041_v31, %v3255_v32  ;;  %v3614_v43 = vor.u32 %v4134_v52, %v3613_v41  ;;  %v3138_v31 = vor.u32 %v4011_v28, %v3135_v29  ;;  %v3687_v32 = vld [vmem:[#allocation10 + $0x5e8] sm:$0xf0]  ;;  %v3423_v41 = vld [vmem:[#allocation10 + $0x3d8] sm:$0xf0]  ;;  %v4071_v53 = vld [vmem:[#allocation10 + $0x364] sm:$0xf] }
  0x70   :  { %1833 = vmatpush.bf16.msra.mxu0 %v3062_v34  ;;  %v3987_v34 = vld [vmem:[#allocation10 + $0xc4] sm:$0xf]  ;;  %v4550_v51 = vld [vmem:[#allocation8] sm:$0xf]  ;;  %s2667_s3 = sshll.u32 %s4461_s27, 4  ;;  %s2669_s30 = sshll.u32 %s4635_s9, 4  ;;  %s2668_s3 = int_to_ptr.vmem [resolvable:$true] %s2667_s3  ;;  %s2670_s30 = int_to_ptr.hbm [resolvable:$true] %s2669_s30 }
  0x71   :  { %1846 = vmatpush.bf16.msra.mxu1 %v3254_v39  ;;  %v3042_v37 = vor.u32 %v3987_v34, %v3039_v35  ;;  %v3015_v39 = vld [vmem:[#allocation10 + $0xa8] sm:$0xf0]  ;;  %v4089_v34 = vld [vmem:[#allocation10 + $0x3f4] sm:$0xf]  ;;  %v3327_v14 = vld [vmem:[#allocation10 + $0x318] sm:$0xf0] }
  0x72   :  { %1859 = vmatpush.bf16.msra.mxu2 %v3446_v44  ;;  %v3018_v40 = vor.u32 %v3981_v38, %v3015_v39  ;;  %v3231_v44 = vld [vmem:[#allocation10 + $0x258] sm:$0xf0]  ;;  %v3447_v35 = vld [vmem:[#allocation10 + $0x408] sm:$0xf0] }
  0x73   :  { %1872 = vmatpush.bf16.msra.mxu3 %v3638_v55  ;;  %v4029_v55 = vld [vmem:[#allocation10 + $0x214] sm:$0xf]  ;;  %v3663_v38 = vld [vmem:[#allocation10 + $0x5b8] sm:$0xf0] }
  0x74   :  { %1834 = vmatpush.bf16.msra.mxu0 %v3038_v56  ;;  %v3234_v56 = vor.u32 %v4035_v42, %v3231_v44  ;;  %v4137_v42 = vld [vmem:[#allocation10 + $0x574] sm:$0xf] }
  0x75   :  { %1847 = vmatpush.bf16.msra.mxu1 %v3230_v49  ;;  %v2991_v49 = vld [vmem:[#allocation10 + $0x78] sm:$0xf0] }
  0x76   :  { %1860 = vmatpush.bf16.msra.mxu2 %v3422_v57  ;;  %v2994_v50 = vor.u32 %v3975_v47, %v2991_v49  ;;  %v3207_v57 = vld [vmem:[#allocation10 + $0x228] sm:$0xf0]  ;;  %v4548_v47 = vld [vmem:[#allocation7] sm:$0xf]  ;;  %v3615_v49 = vld [vmem:[#allocation10 + $0x558] sm:$0xf0] }
  0x77   :  { %1873 = vmatpush.bf16.msra.mxu3 %v3614_v43  ;;  %v3639_v43 = vld [vmem:[#allocation10 + $0x588] sm:$0xf0]  ;;  %v646_v12 = vperm.slane %v4548_v47, 1 }
  0x78   :  { %1835 = vmatpush.bf16.msra.mxu0 %v3014_v58  ;;  %v3210_v58 = vor.u32 %v4029_v55, %v3207_v57  ;;  %v3642_v44 = vor.u32 %v4137_v42, %v3639_v43  ;;  %v645_v57 = vperm.slane %v4548_v47, 0 }
  0x79   :  { %1848 = vmatpush.bf16.msra.mxu1 %v3206_v63  ;;  %v2967_v63 = vld [vmem:[#allocation10 + $0x48] sm:$0xf0] }
  0x7a   :  { %1861 = vmatpush.bf16.msra.mxu2 %v3398_v2  ;;  %v2970_v0 = vor.u32 %v3969_v62, %v2967_v63  ;;  %v4122_v2 = vld [vmem:[#allocation10 + $0x4f4] sm:$0xf0]  ;;  %v659_v63 = vperm.slane %v4550_v51, 0 }
  0x7b   :  { %1874 = vmatpush.bf16.msra.mxu3 %v3590_v54  ;;  %v3566_v4 = vor.u32 %v4122_v2, %v3565_v1  ;;  %v3375_v54 = vld [vmem:[#allocation10 + $0x378] sm:$0xf0]  ;;  %v4065_v1 = vld [vmem:[#allocation10 + $0x334] sm:$0xf]  ;;  %v3351_v2 = vld [vmem:[#allocation10 + $0x348] sm:$0xf0] }
  0x7c   :  { %1836 = vmatpush.bf16.msra.mxu0 %v2990_v3  ;;  %v4023_v3 = vld [vmem:[#allocation10 + $0x1e4] sm:$0xf] }
  0x7d   :  { %1849 = vmatpush.bf16.msra.mxu1 %v3182_v6  ;;  %v3186_v6 = vor.u32 %v4023_v3, %v3183_v5  ;;  %v4119_v5 = vld [vmem:[#allocation10 + $0x4e4] sm:$0xf] }
  0x7e   :  { %1862 = vmatpush.bf16.msra.mxu2 %v3374_v48  ;;  %v4131_v48 = vld [vmem:[#allocation10 + $0x544] sm:$0xf] }
  0x7f   :  { %1875 = vmatpush.bf16.msra.mxu3 %v3566_v4  ;;  %v3354_v4 = vor.u32 %v4065_v1, %v3351_v2  ;;  %v647_v1 = vperm.slane %v4548_v47, 2 }
  0x80   :  { %1837 = vmatpush.bf16.msra.mxu0 %v2966_v9  ;;  %v3326_v9 = vor.u32 %v4062_v8, %v3325_v7  ;;  %v3117_v8 = vld [vmem:[#allocation10 + $0x158] sm:$0xf] }
  0x81   :  { %1850 = vmatpush.bf16.msra.mxu1 %v3158_v13  ;;  %v2946_v13 = vor.u32 %v3963_v10, %v2943_v11 }
  0x82   :  { %1863 = vmatpush.bf16.msra.mxu2 %v3350_v61  ;;  %v3591_v61 = vld [vmem:[#allocation10 + $0x528] sm:$0xf0] }
  0x83   :  { %1876 = vmatpush.bf16.msra.mxu3 %v3542_v18 }
  0x84   :  { %1838 = vmatpush.bf16.msra.mxu0 %v2942_v19  ;;  %v4017_v19 = vld [vmem:[#allocation10 + $0x1b4] sm:$0xf] }
  0x85   :  { %1851 = vmatpush.bf16.msra.mxu1 %v3134_v21 }
  0x86   :  { %1864 = vmatpush.bf16.msra.mxu2 %v3326_v9  ;;  %v4009_v9 = vld [vmem:[#allocation10 + $0x16c] sm:$0xf0] }
  0x88   :  { %1883 = vmatpush.bf16.msrb.mxu0 %v3114_v20  ;;  %v3159_v20 = vld [vmem:[#allocation10 + $0x1c8] sm:$0xf0] }
  0x89   :  { %1896 = vmatpush.bf16.msrb.mxu1 %v3306_v24  ;;  %v3162_v21 = vor.u32 %v4017_v19, %v3159_v20  ;;  %v3474_v24 = vor.u32 %v4095_v22, %v3471_v23  ;;  %v660_v20 = vperm.slane %v4550_v51, 1  ;;  %v3093_v22 = vld [vmem:[#allocation10 + $0x128] sm:$0xf] }
  0x8a   :  { %1909 = vmatpush.bf16.msrb.mxu2 %v3498_v15 }
  0x8c   :  { %1884 = vmatpush.bf16.msrb.mxu0 %v3090_v27  ;;  %v3518_v27 = vor.u32 %v4110_v26, %v3517_v25  ;;  %v4003_v25 = vld [vmem:[#allocation10 + $0x13c] sm:$0xf0]  ;;  %v4113_v26 = vld [vmem:[#allocation10 + $0x4b4] sm:$0xf] }
  0x8d   :  { %1897 = vmatpush.bf16.msrb.mxu1 %v3282_v30  ;;  %v4149_v30 = vld [vmem:[#allocation10 + $0x5d4] sm:$0xf] }
  0x8e   :  { %1910 = vmatpush.bf16.msrb.mxu2 %v3474_v24  ;;  %1877 = vmatpush.bf16.msra.mxu3 %v3518_v27  ;;  %v3543_v27 = vld [vmem:[#allocation10 + $0x4c8] sm:$0xf0] }
  0x8f   :  { %v3546_v29 = vor.u32 %v4113_v26, %v3543_v27 }
  0x90   :  { %1885 = vmatpush.bf16.msrb.mxu0 %v3066_v33  ;;  %v3690_v33 = vor.u32 %v4149_v30, %v3687_v32  ;;  %v3309_v30 = vld [vmem:[#allocation10 + $0x2d8] sm:$0xf]  ;;  %v3094_v32 = vor.u32 %v4003_v25, %v3093_v22 }
  0x91   :  { %1898 = vmatpush.bf16.msrb.mxu1 %v3258_v36  ;;  %v3450_v36 = vor.u32 %v4089_v34, %v3447_v35  ;;  %v4107_v34 = vld [vmem:[#allocation10 + $0x484] sm:$0xf]  ;;  %v3519_v35 = vld [vmem:[#allocation10 + $0x498] sm:$0xf0] }
  0x92   :  { %1922 = vmatpush.bf16.msrb.mxu3 %v3690_v33  ;;  %v4057_v33 = vld [vmem:[#allocation10 + $0x2ec] sm:$0xf0] }
  0x93   :  { %1911 = vmatpush.bf16.msrb.mxu2 %v3450_v36  ;;  %v3069_v36 = vld [vmem:[#allocation10 + $0xf8] sm:$0xf] }
  0x94   :  { %1886 = vmatpush.bf16.msrb.mxu0 %v3042_v37  ;;  %v4143_v37 = vld [vmem:[#allocation10 + $0x5a4] sm:$0xf] }
  0x95   :  { %1899 = vmatpush.bf16.msrb.mxu1 %v3234_v56  ;;  %v3666_v39 = vor.u32 %v4143_v37, %v3663_v38  ;;  %v4077_v56 = vld [vmem:[#allocation10 + $0x394] sm:$0xf]  ;;  %v3997_v37 = vld [vmem:[#allocation10 + $0x10c] sm:$0xf0]  ;;  %v3522_v38 = vor.u32 %v4107_v34, %v3519_v35 }
  0x96   :  { %v3402_v46 = vor.u32 %v4077_v56, %v3399_v45  ;;  %v3070_v43 = vor.u32 %v3997_v37, %v3069_v36  ;;  %v4051_v56 = vld [vmem:[#allocation10 + $0x2bc] sm:$0xf0]  ;;  %v3045_v45 = vld [vmem:[#allocation10 + $0xc8] sm:$0xf] }
  0x97   :  { %1923 = vmatpush.bf16.msrb.mxu3 %v3666_v39  ;;  %v3477_v37 = vld [vmem:[#allocation10 + $0x428] sm:$0xf] }
  0x98   :  { %1887 = vmatpush.bf16.msrb.mxu0 %v3018_v40  ;;  %v4083_v40 = vld [vmem:[#allocation10 + $0x3c4] sm:$0xf] }
  0x99   :  { %1900 = vmatpush.bf16.msrb.mxu1 %v3210_v58  ;;  %v3426_v52 = vor.u32 %v4083_v40, %v3423_v41  ;;  %v3378_v58 = vor.u32 %v4071_v53, %v3375_v54  ;;  %v3310_v41 = vor.u32 %v4057_v33, %v3309_v30  ;;  %v4045_v53 = vld [vmem:[#allocation10 + $0x28c] sm:$0xf0]  ;;  %v3021_v54 = vld [vmem:[#allocation10 + $0x98] sm:$0xf]  ;;  %v662_v33 = vperm.slane %v4550_v51, 3 }
  0x9a   :  { %v3165_v30 = vld [vmem:[#allocation10 + $0x1b8] sm:$0xf] }
  0x9b   :  { %1912 = vmatpush.bf16.msrb.mxu2 %v3426_v52  ;;  %1924 = vmatpush.bf16.msrb.mxu3 %v3642_v44  ;;  %v3285_v44 = vld [vmem:[#allocation10 + $0x2a8] sm:$0xf] }
  0x9c   :  { %1888 = vmatpush.bf16.msrb.mxu0 %v2994_v50  ;;  %v3618_v50 = vor.u32 %v4131_v48, %v3615_v49  ;;  %v3286_v48 = vor.u32 %v4051_v56, %v3285_v44  ;;  %v4015_v44 = vld [vmem:[#allocation10 + $0x19c] sm:$0xf0]  ;;  %v3693_v56 = vld [vmem:[#allocation10 + $0x5d8] sm:$0xf] }
  0x9d   :  { %1901 = vmatpush.bf16.msrb.mxu1 %v3186_v6  ;;  %v3567_v6 = vld [vmem:[#allocation10 + $0x4f8] sm:$0xf0] }
  0x9e   :  { %v3570_v10 = vor.u32 %v4119_v5, %v3567_v6  ;;  %v2973_v6 = vld [vmem:[#allocation10 + $0x38] sm:$0xf] }
  0x9f   :  { %1913 = vmatpush.bf16.msrb.mxu2 %v3402_v46  ;;  %1925 = vmatpush.bf16.msrb.mxu3 %v3618_v50  ;;  %v3991_v46 = vld [vmem:[#allocation10 + $0xdc] sm:$0xf0]  ;;  %v3261_v50 = vld [vmem:[#allocation10 + $0x278] sm:$0xf] }
  0xa0   :  { %1889 = vmatpush.bf16.msrb.mxu0 %v2970_v0  ;;  %v3594_v0 = vor.u32 %v4125_v60, %v3591_v61  ;;  %v3046_v49 = vor.u32 %v3991_v46, %v3045_v45  ;;  %v4039_v60 = vld [vmem:[#allocation10 + $0x25c] sm:$0xf0]  ;;  %v2997_v61 = vld [vmem:[#allocation10 + $0x68] sm:$0xf]  ;;  %v4153_v45 = vld [vmem:[#allocation10 + $0x5ec] sm:$0xf0] }
  0xa1   :  { %1902 = vmatpush.bf16.msrb.mxu1 %v3162_v21  ;;  %v3118_v21 = vor.u32 %v4009_v9, %v3117_v8  ;;  %v661_v9 = vperm.slane %v4550_v51, 2 }
  0xa3   :  { %1914 = vmatpush.bf16.msrb.mxu2 %v3378_v58  ;;  %1926 = vmatpush.bf16.msrb.mxu3 %v3594_v0 }
  0xa4   :  { %1890 = vmatpush.bf16.msrb.mxu0 %v2946_v13  ;;  %v4059_v13 = vld [vmem:[#allocation10 + $0x304] sm:$0xf] }
  0xa5   :  { %1903 = vmatpush.bf16.msrb.mxu1 %v3138_v31  ;;  %v3330_v18 = vor.u32 %v4059_v13, %v3327_v14  ;;  %v3189_v13 = vld [vmem:[#allocation10 + $0x1e8] sm:$0xf]  ;;  %v4027_v14 = vld [vmem:[#allocation10 + $0x1fc] sm:$0xf0] }
  0xa6   :  { %v3190_v25 = vor.u32 %v4027_v14, %v3189_v13  ;;  %v3645_v13 = vld [vmem:[#allocation10 + $0x578] sm:$0xf] }
  0xa7   :  { %1915 = vmatpush.bf16.msrb.mxu2 %v3354_v4  ;;  %1927 = vmatpush.bf16.msrb.mxu3 %v3570_v10  ;;  %v4033_v4 = vld [vmem:[#allocation10 + $0x22c] sm:$0xf0] }
  0xab   :  { %1916 = vmatpush.bf16.msrb.mxu2 %v3330_v18  ;;  %1928 = vmatpush.bf16.msrb.mxu3 %v3546_v29 }
  0xaf   :  { %1929 = vmatpush.bf16.msrb.mxu3 %v3522_v38 }
  0xc4   :  { %v548_v55 = vpop.f32.mrf.mxu0 }
  0xc5   :  { %v561_v59 = vpop.f32.mrf.mxu1 }
  0xc6   :  { %v562_v62 = vadd.f32 %v561_v59, %v548_v55  ;;  %v3985_v55 = vld [vmem:[#allocation10 + $0xac] sm:$0xf0]  ;;  %v3237_v59 = vld [vmem:[#allocation10 + $0x248] sm:$0xf] }
  0xc7   :  { %v3022_v58 = vor.u32 %v3985_v55, %v3021_v54  ;;  %v4093_v54 = vld [vmem:[#allocation10 + $0x40c] sm:$0xf0]  ;;  %v3994_v55 = vld [vmem:[#allocation10 + $0xfc] sm:$0xf] }
  0xc8   :  { %v653_v3 = vmul.f32 %v645_v57, %v562_v62  ;;  %v3262_v57 = vor.u32 %v4045_v53, %v3261_v50  ;;  %v3979_v62 = vld [vmem:[#allocation10 + $0x7c] sm:$0xf0]  ;;  %v3311_v50 = vld [vmem:[#allocation10 + $0x2f0] sm:$0xf0]  ;;  %v3453_v53 = vld [vmem:[#allocation10 + $0x3f8] sm:$0xf] }
  0xc9   :  { %v2998_v2 = vor.u32 %v3979_v62, %v2997_v61  ;;  %v3694_v62 = vor.u32 %v4153_v45, %v3693_v56  ;;  %v2975_v56 = vld [vmem:[#allocation10 + $0x50] sm:$0xf0]  ;;  %v3357_v45 = vld [vmem:[#allocation10 + $0x338] sm:$0xf] }
  0xca   :  { %v667_v7 = vadd.f32 %v659_v63, %v653_v3  ;;  %v3238_v63 = vor.u32 %v4039_v60, %v3237_v59  ;;  %v3213_v3 = vld [vmem:[#allocation10 + $0x218] sm:$0xf] }
  0xcb   :  { %v3214_v10 = vor.u32 %v4033_v4, %v3213_v3  ;;  %v3454_v3 = vor.u32 %v4093_v54, %v3453_v53  ;;  %v4123_v53 = vld [vmem:[#allocation10 + $0x4fc] sm:$0xf0]  ;;  %v4024_v54 = vld [vmem:[#allocation10 + $0x1ec] sm:$0xf] }
  0xcc   :  { %v574_v11 = vpop.f32.mrf.mxu2  ;;  %v671_v15 = vmax.f32 %v667_v7, 0.0  ;;  %v550_v17 = vpop.f32.mrf.mxu0  ;;  %v3973_v7 = vld [vmem:[#allocation10 + $0x4c] sm:$0xf0] }
  0xcd   :  { %v587_v16 = vpop.f32.mrf.mxu3  ;;  %v563_v23 = vpop.f32.mrf.mxu1  ;;  %v3501_v17 = vld [vmem:[#allocation10 + $0x458] sm:$0xf] }
  0xce   :  { %v588_v19 = vadd.f32 %v587_v16, %v574_v11  ;;  %v4556_v24 = vpack.c.bf16 %v671_v15, %v671_v15  ;;  %v2949_v15 = vld [vmem:[#allocation10 + $0x8] sm:$0xf]  ;;  %v3967_v16 = vld [vmem:[#allocation10 + $0x1c] sm:$0xf0]  ;;  %v648_v23 = vperm.slane %v4548_v47, 3 }
  0xcf   :  { %v2950_v29 = vor.u32 %v3967_v16, %v2949_v15  ;;  %v3095_v47 = vld [vmem:[#allocation10 + $0x140] sm:$0xf0]  ;;  %v4141_v16 = vld [vmem:[#allocation10 + $0x58c] sm:$0xf0] }
  0xd0   :  { %v654_v28 = vmul.f32 %v646_v12, %v588_v19  ;;  %1839 = vmatmul.bf16.vlgmr.msra.gmra.mxu0 %v4556_v24  ;;  %v2974_v12 = vor.u32 %v3973_v7, %v2973_v6  ;;  %v4105_v19 = vld [vmem:[#allocation10 + $0x46c] sm:$0xf0]  ;;  %v3287_v6 = vld [vmem:[#allocation10 + $0x2c0] sm:$0xf0]  ;;  %v3429_v7 = vld [vmem:[#allocation10 + $0x3c8] sm:$0xf] }
  0xd1   :  { %1935 = vmatpush.bf16.msra.mxu0 %v3118_v21  ;;  %v3119_v21 = vld [vmem:[#allocation10 + $0x170] sm:$0xf0]  ;;  %v3502_v35 = vor.u32 %v4105_v19, %v3501_v17  ;;  %v4042_v17 = vld [vmem:[#allocation10 + $0x27c] sm:$0xf] }
  0xd2   :  { %v668_v31 = vadd.f32 %v660_v20, %v654_v28  ;;  %v4006_v20 = vld [vmem:[#allocation10 + $0x15c] sm:$0xf] }
  0xd3   :  { %v3122_v36 = vor.u32 %v4006_v20, %v3119_v21  ;;  %v3982_v19 = vld [vmem:[#allocation10 + $0x9c] sm:$0xf]  ;;  %v3023_v20 = vld [vmem:[#allocation10 + $0xb0] sm:$0xf0]  ;;  %v3405_v21 = vld [vmem:[#allocation10 + $0x398] sm:$0xf] }
  0xd4   :  { %v672_v39 = vmax.f32 %v668_v31, 0.0  ;;  %v576_v40 = vpop.f32.mrf.mxu2  ;;  %v4021_v31 = vld [vmem:[#allocation10 + $0x1cc] sm:$0xf0] }
  0xd5   :  { %v589_v52 = vpop.f32.mrf.mxu3  ;;  %1936 = vmatpush.bf16.msra.mxu0 %v3094_v32  ;;  %v4000_v40 = vld [vmem:[#allocation10 + $0x12c] sm:$0xf] }
  0xd6   :  { %v4559_v42 = vpack.c.bf16 %v672_v39, %v672_v39  ;;  %v4099_v39 = vld [vmem:[#allocation10 + $0x43c] sm:$0xf0]  ;;  %v3166_v52 = vor.u32 %v4021_v31, %v3165_v30  ;;  %v3239_v30 = vld [vmem:[#allocation10 + $0x260] sm:$0xf0] }
  0xd7   :  { %v3478_v46 = vor.u32 %v4099_v39, %v3477_v37  ;;  %v3597_v39 = vld [vmem:[#allocation10 + $0x518] sm:$0xf] }
  0xd8   :  { %1852 = vmatmul.bf16.vlgmr.msra.gmra.mxu1 %v4559_v42 }
  0xd9   :  { %1948 = vmatpush.bf16.msra.mxu1 %v3310_v41  ;;  %1937 = vmatpush.bf16.msra.mxu0 %v3070_v43  ;;  %v3141_v43 = vld [vmem:[#allocation10 + $0x188] sm:$0xf] }
  0xda   :  { %v3142_v60 = vor.u32 %v4015_v44, %v3141_v43  ;;  %v3970_v44 = vld [vmem:[#allocation10 + $0x3c] sm:$0xf] }
  0xdd   :  { %1949 = vmatpush.bf16.msra.mxu1 %v3286_v48  ;;  %1938 = vmatpush.bf16.msra.mxu0 %v3046_v49  ;;  %v3098_v48 = vor.u32 %v4000_v40, %v3095_v47  ;;  %v4054_v49 = vld [vmem:[#allocation10 + $0x2dc] sm:$0xf]  ;;  %v4129_v47 = vld [vmem:[#allocation10 + $0x52c] sm:$0xf0] }
  0xe0   :  { %1891 = vmatmul.bf16.vlgmr.msrb.gmra.mxu0 %v4556_v24 }
  0xe1   :  { %1950 = vmatpush.bf16.msra.mxu1 %v3262_v57  ;;  %1939 = vmatpush.bf16.msra.mxu0 %v3022_v58  ;;  %v3071_v57 = vld [vmem:[#allocation10 + $0x110] sm:$0xf0] }
  0xe2   :  { %v3074_v4 = vor.u32 %v3994_v55, %v3071_v57  ;;  %v3191_v55 = vld [vmem:[#allocation10 + $0x200] sm:$0xf0] }
  0xe4   :  { %v600_v0 = vpop.f32.mrf.mxu0 }
  0xe5   :  { %v613_v5 = vpop.f32.mrf.mxu1  ;;  %1951 = vmatpush.bf16.msra.mxu1 %v3238_v63  ;;  %1940 = vmatpush.bf16.msra.mxu0 %v2998_v2  ;;  %v3314_v63 = vor.u32 %v4054_v49, %v3311_v50  ;;  %v3573_v49 = vld [vmem:[#allocation10 + $0x4e8] sm:$0xf]  ;;  %v2978_v50 = vor.u32 %v3970_v44, %v2975_v56  ;;  %v3053_v44 = vld [vmem:[#allocation10 + $0xd0] sm:$0xf] }
  0xe6   :  { %v614_v8 = vadd.f32 %v613_v5, %v600_v0  ;;  %v3669_v0 = vld [vmem:[#allocation10 + $0x5a8] sm:$0xf]  ;;  %v4048_v5 = vld [vmem:[#allocation10 + $0x2ac] sm:$0xf] }
  0xe7   :  { %v3992_v56 = vld [vmem:[#allocation10 + $0xe4] sm:$0xf0] }
  0xe8   :  { %v655_v11 = vmul.f32 %v647_v1, %v614_v8  ;;  %1904 = vmatmul.bf16.vlgmr.msrb.gmra.mxu1 %v4559_v42  ;;  %v4147_v1 = vld [vmem:[#allocation10 + $0x5bc] sm:$0xf0] }
  0xe9   :  { %1952 = vmatpush.bf16.msra.mxu1 %v3214_v10  ;;  %1941 = vmatpush.bf16.msra.mxu0 %v2974_v12  ;;  %v4087_v8 = vld [vmem:[#allocation10 + $0x3dc] sm:$0xf0]  ;;  %v3047_v10 = vld [vmem:[#allocation10 + $0xe0] sm:$0xf0]  ;;  %v3290_v12 = vor.u32 %v4048_v5, %v3287_v6  ;;  %v3549_v5 = vld [vmem:[#allocation10 + $0x4b8] sm:$0xf] }
  0xea   :  { %v669_v18 = vadd.f32 %v661_v9, %v655_v11  ;;  %v3988_v9 = vld [vmem:[#allocation10 + $0xcc] sm:$0xf]  ;;  %v3670_v11 = vor.u32 %v4147_v1, %v3669_v0  ;;  %v3430_v14 = vor.u32 %v4087_v8, %v3429_v7  ;;  %v3574_v0 = vor.u32 %v4123_v53, %v3573_v49  ;;  %v4117_v7 = vld [vmem:[#allocation10 + $0x4cc] sm:$0xf0]  ;;  %v4018_v8 = vld [vmem:[#allocation10 + $0x1bc] sm:$0xf] }
  0xeb   :  { %v3050_v15 = vor.u32 %v3988_v9, %v3047_v10  ;;  %v3194_v1 = vor.u32 %v4024_v54, %v3191_v55  ;;  %v3167_v9 = vld [vmem:[#allocation10 + $0x1d0] sm:$0xf0]  ;;  %v4138_v49 = vld [vmem:[#allocation10 + $0x57c] sm:$0xf]  ;;  %v3269_v54 = vld [vmem:[#allocation10 + $0x280] sm:$0xf] }
  0xec   :  { %v626_v22 = vpop.f32.mrf.mxu2  ;;  %v673_v26 = vmax.f32 %v669_v18, 0.0  ;;  %v602_v28 = vpop.f32.mrf.mxu0  ;;  %v3263_v18 = vld [vmem:[#allocation10 + $0x290] sm:$0xf0]  ;;  %v4046_v55 = vld [vmem:[#allocation10 + $0x294] sm:$0xf0] }
  0xed   :  { %v639_v27 = vpop.f32.mrf.mxu3  ;;  %v615_v34 = vpop.f32.mrf.mxu1  ;;  %1953 = vmatpush.bf16.msra.mxu1 %v3190_v25  ;;  %1942 = vmatpush.bf16.msra.mxu0 %v2950_v29  ;;  %v3266_v25 = vor.u32 %v4042_v17, %v3263_v18  ;;  %v4135_v28 = vld [vmem:[#allocation10 + $0x55c] sm:$0xf0]  ;;  %v4036_v29 = vld [vmem:[#allocation10 + $0x24c] sm:$0xf]  ;;  %v3170_v17 = vor.u32 %v4018_v8, %v3167_v9  ;;  %v3479_v18 = vld [vmem:[#allocation10 + $0x440] sm:$0xf0] }
  0xee   :  { %v640_v32 = vadd.f32 %v639_v27, %v626_v22  ;;  %v4568_v38 = vpack.c.bf16 %v673_v26, %v673_v26  ;;  %v4081_v22 = vld [vmem:[#allocation10 + $0x3ac] sm:$0xf0]  ;;  %v3621_v26 = vld [vmem:[#allocation10 + $0x548] sm:$0xf]  ;;  %v3026_v27 = vor.u32 %v3982_v19, %v3023_v20  ;;  %v3242_v37 = vor.u32 %v4036_v29, %v3239_v30  ;;  %v4111_v20 = vld [vmem:[#allocation10 + $0x49c] sm:$0xf0] }
  0xef   :  { %v3406_v31 = vor.u32 %v4081_v22, %v3405_v21  ;;  %v3381_v34 = vld [vmem:[#allocation10 + $0x368] sm:$0xf]  ;;  %v4012_v21 = vld [vmem:[#allocation10 + $0x18c] sm:$0xf]  ;;  %v3143_v22 = vld [vmem:[#allocation10 + $0x1a0] sm:$0xf0] }
  0xf0   :  { %v656_v41 = vmul.f32 %v648_v23, %v640_v32  ;;  %1865 = vmatmul.bf16.vlgmr.msra.gmra.mxu2 %v4568_v38  ;;  %1943 = vmatmul.bf16.vlgmr.msra.gmra.mxu0 %v4556_v24  ;;  %v3646_v23 = vor.u32 %v4141_v16, %v3645_v13  ;;  %v3976_v32 = vld [vmem:[#allocation10 + $0x6c] sm:$0xf]  ;;  %v3550_v16 = vor.u32 %v4117_v7, %v3549_v5  ;;  %v3525_v19 = vld [vmem:[#allocation10 + $0x488] sm:$0xf]  ;;  %v3077_v30 = vld [vmem:[#allocation10 + $0x100] sm:$0xf] }
  0xf1   :  { %1961 = vmatpush.bf16.msra.mxu2 %v3502_v35  ;;  %1987 = vmatpush.bf16.msrb.mxu0 %v3122_v36  ;;  %v4075_v35 = vld [vmem:[#allocation10 + $0x37c] sm:$0xf0]  ;;  %v3622_v36 = vor.u32 %v4135_v28, %v3621_v26  ;;  %v4096_v13 = vld [vmem:[#allocation10 + $0x42c] sm:$0xf]  ;;  %v3695_v26 = vld [vmem:[#allocation10 + $0x5f0] sm:$0xf0] }
  0xf2   :  { %v670_v51 = vadd.f32 %v662_v33, %v656_v41  ;;  %1954 = vmatpush.bf16.msra.mxu1 %v3166_v52  ;;  %v2999_v33 = vld [vmem:[#allocation10 + $0x80] sm:$0xf0]  ;;  %v4030_v41 = vld [vmem:[#allocation10 + $0x21c] sm:$0xf]  ;;  %v3215_v52 = vld [vmem:[#allocation10 + $0x230] sm:$0xf0]  ;;  %v3382_v43 = vor.u32 %v4075_v35, %v3381_v34  ;;  %v3482_v29 = vor.u32 %v4096_v13, %v3479_v18 }
  0xf3   :  { %v3002_v40 = vor.u32 %v3976_v32, %v2999_v33  ;;  %v4058_v28 = vld [vmem:[#allocation10 + $0x2f4] sm:$0xf0]  ;;  %v3526_v32 = vor.u32 %v4111_v20, %v3525_v19  ;;  %v3146_v33 = vor.u32 %v4012_v21, %v3143_v22  ;;  %v4090_v34 = vld [vmem:[#allocation10 + $0x3fc] sm:$0xf]  ;;  %v3455_v35 = vld [vmem:[#allocation10 + $0x410] sm:$0xf0] }
  0xf4   :  { %v674_v58 = vmax.f32 %v670_v51, 0.0  ;;  %v628_v59 = vpop.f32.mrf.mxu2  ;;  %v4069_v51 = vld [vmem:[#allocation10 + $0x34c] sm:$0xf0]  ;;  %v3647_v53 = vld [vmem:[#allocation10 + $0x590] sm:$0xf0] }
  0xf5   :  { %v641_v61 = vpop.f32.mrf.mxu3  ;;  %1962 = vmatpush.bf16.msra.mxu2 %v3478_v46  ;;  %1988 = vmatpush.bf16.msrb.mxu0 %v3098_v48  ;;  %v3598_v46 = vor.u32 %v4129_v47, %v3597_v39  ;;  %v3218_v48 = vor.u32 %v4030_v41, %v3215_v52  ;;  %v3358_v57 = vor.u32 %v4069_v51, %v3357_v45  ;;  %v3964_v59 = vld [vmem:[#allocation10 + $0xc] sm:$0xf]  ;;  %v3671_v47 = vld [vmem:[#allocation10 + $0x5c0] sm:$0xf0]  ;;  %v3293_v41 = vld [vmem:[#allocation10 + $0x2b0] sm:$0xf] }
  0xf6   :  { %v4572_v2 = vpack.c.bf16 %v674_v58, %v674_v58  ;;  %1955 = vmatpush.bf16.msra.mxu1 %v3142_v60  ;;  %v3333_v58 = vld [vmem:[#allocation10 + $0x308] sm:$0xf]  ;;  %v2951_v60 = vld [vmem:[#allocation10 + $0x20] sm:$0xf0]  ;;  %v4063_v61 = vld [vmem:[#allocation10 + $0x31c] sm:$0xf0] }
  0xf7   :  { %v2954_v6 = vor.u32 %v3964_v59, %v2951_v60  ;;  %v3334_v10 = vor.u32 %v4063_v61, %v3333_v58  ;;  %v4144_v39 = vld [vmem:[#allocation10 + $0x5ac] sm:$0xf]  ;;  %v4052_v52 = vld [vmem:[#allocation10 + $0x2c4] sm:$0xf0]  ;;  %v3431_v51 = vld [vmem:[#allocation10 + $0x3e0] sm:$0xf0] }
  0xf8   :  { %1878 = vmatmul.bf16.vlgmr.msra.gmra.mxu3 %v4572_v2  ;;  %v4084_v45 = vld [vmem:[#allocation10 + $0x3cc] sm:$0xf]  ;;  %v3029_v58 = vld [vmem:[#allocation10 + $0xa0] sm:$0xf]  ;;  %v3986_v59 = vld [vmem:[#allocation10 + $0xb4] sm:$0xf0] }
  0xf9   :  { %1974 = vmatpush.bf16.msra.mxu3 %v3694_v62  ;;  %1963 = vmatpush.bf16.msra.mxu2 %v3454_v3  ;;  %v3125_v62 = vld [vmem:[#allocation10 + $0x160] sm:$0xf]  ;;  %v4102_v3 = vld [vmem:[#allocation10 + $0x45c] sm:$0xf]  ;;  %v3407_v61 = vld [vmem:[#allocation10 + $0x3b0] sm:$0xf0] }
  0xfa   :  { %2000 = vmatpush.bf16.msrb.mxu1 %v3314_v63  ;;  %1989 = vmatpush.bf16.msrb.mxu0 %v3074_v4  ;;  %v4010_v63 = vld [vmem:[#allocation10 + $0x174] sm:$0xf0]  ;;  %v3503_v4 = vld [vmem:[#allocation10 + $0x470] sm:$0xf0]  ;;  %v4078_v60 = vld [vmem:[#allocation10 + $0x39c] sm:$0xf] }
  0xfb   :  { %1956 = vmatmul.bf16.vlgmr.msra.gmra.mxu1 %v4559_v42  ;;  %v4040_v5 = vld [vmem:[#allocation10 + $0x264] sm:$0xf0]  ;;  %v3005_v7 = vld [vmem:[#allocation10 + $0x70] sm:$0xf]  ;;  %v4072_v9 = vld [vmem:[#allocation10 + $0x36c] sm:$0xf] }
  0xfc   :  { %v3980_v8 = vld [vmem:[#allocation10 + $0x84] sm:$0xf0]  ;;  %v4126_v13 = vld [vmem:[#allocation10 + $0x51c] sm:$0xf]  ;;  %v2981_v19 = vld [vmem:[#allocation10 + $0x40] sm:$0xf] }
  0xfd   :  { %1975 = vmatpush.bf16.msra.mxu3 %v3670_v11  ;;  %1964 = vmatpush.bf16.msra.mxu2 %v3430_v14  ;;  %v3126_v11 = vor.u32 %v4010_v63, %v3125_v62  ;;  %v3101_v14 = vld [vmem:[#allocation10 + $0x130] sm:$0xf]  ;;  %v3650_v62 = vor.u32 %v4138_v49, %v3647_v53  ;;  %v3270_v63 = vor.u32 %v4046_v55, %v3269_v54  ;;  %v3974_v20 = vld [vmem:[#allocation10 + $0x54] sm:$0xf0]  ;;  %v4066_v21 = vld [vmem:[#allocation10 + $0x33c] sm:$0xf] }
  0xfe   :  { %2001 = vmatpush.bf16.msrb.mxu1 %v3290_v12  ;;  %1990 = vmatpush.bf16.msrb.mxu0 %v3050_v15  ;;  %v3506_v12 = vor.u32 %v4102_v3, %v3503_v4  ;;  %v4004_v15 = vld [vmem:[#allocation10 + $0x144] sm:$0xf0]  ;;  %v3623_v3 = vld [vmem:[#allocation10 + $0x560] sm:$0xf0]  ;;  %v3245_v4 = vld [vmem:[#allocation10 + $0x250] sm:$0xf] }
  0xff   :  { %v3359_v22 = vld [vmem:[#allocation10 + $0x350] sm:$0xf0]  ;;  %v3485_v49 = vld [vmem:[#allocation10 + $0x430] sm:$0xf]  ;;  %v3103_v53 = vld [vmem:[#allocation10 + $0x148] sm:$0xf0] }
 0x100   :  { %1917 = vmatmul.bf16.vlgmr.msrb.gmra.mxu2 %v4568_v38 }
 0x101   :  { %1976 = vmatpush.bf16.msra.mxu3 %v3646_v23  ;;  %1965 = vmatpush.bf16.msra.mxu2 %v3406_v31  ;;  %v4150_v23 = vld [vmem:[#allocation10 + $0x5dc] sm:$0xf]  ;;  %v3998_v31 = vld [vmem:[#allocation10 + $0x114] sm:$0xf0] }
 0x102   :  { %2002 = vmatpush.bf16.msrb.mxu1 %v3266_v25  ;;  %1991 = vmatpush.bf16.msrb.mxu0 %v3026_v27  ;;  %v3102_v25 = vor.u32 %v4004_v15, %v3101_v14  ;;  %v3317_v27 = vld [vmem:[#allocation10 + $0x2e0] sm:$0xf]  ;;  %v3006_v14 = vor.u32 %v3980_v8, %v3005_v7  ;;  %v3599_v15 = vld [vmem:[#allocation10 + $0x530] sm:$0xf0] }
 0x105   :  { %1977 = vmatpush.bf16.msra.mxu3 %v3622_v36  ;;  %1966 = vmatpush.bf16.msra.mxu2 %v3382_v43  ;;  %v3698_v36 = vor.u32 %v4150_v23, %v3695_v26  ;;  %v3458_v43 = vor.u32 %v4090_v34, %v3455_v35  ;;  %v3602_v23 = vor.u32 %v4126_v13, %v3599_v15  ;;  %v4120_v26 = vld [vmem:[#allocation10 + $0x4ec] sm:$0xf]  ;;  %v3968_v34 = vld [vmem:[#allocation10 + $0x24] sm:$0xf0]  ;;  %v3335_v35 = vld [vmem:[#allocation10 + $0x320] sm:$0xf0] }
 0x106   :  { %2003 = vmatpush.bf16.msrb.mxu1 %v3242_v37  ;;  %1992 = vmatpush.bf16.msrb.mxu0 %v3002_v40  ;;  %v3318_v37 = vor.u32 %v4058_v28, %v3317_v27  ;;  %v3078_v40 = vor.u32 %v3998_v31, %v3077_v30  ;;  %v2982_v27 = vor.u32 %v3974_v20, %v2981_v19  ;;  %v3575_v28 = vld [vmem:[#allocation10 + $0x500] sm:$0xf0]  ;;  %v4028_v30 = vld [vmem:[#allocation10 + $0x204] sm:$0xf0]  ;;  %v3677_v13 = vld [vmem:[#allocation10 + $0x5b0] sm:$0xf] }
 0x107   :  { %v3362_v31 = vor.u32 %v4066_v21, %v3359_v22  ;;  %v4148_v15 = vld [vmem:[#allocation10 + $0x5c4] sm:$0xf0]  ;;  %v3055_v19 = vld [vmem:[#allocation10 + $0xe8] sm:$0xf0] }
 0x108   :  { %1930 = vmatmul.bf16.vlgmr.msrb.gmra.mxu3 %v4572_v2  ;;  %v3678_v21 = vor.u32 %v4148_v15, %v3677_v13  ;;  %v4103_v13 = vld [vmem:[#allocation10 + $0x464] sm:$0xf]  ;;  %v3511_v15 = vld [vmem:[#allocation10 + $0x478] sm:$0xf0] }
 0x109   :  { %1978 = vmatpush.bf16.msra.mxu3 %v3598_v46  ;;  %1967 = vmatpush.bf16.msra.mxu2 %v3358_v57  ;;  %v3674_v46 = vor.u32 %v4144_v39, %v3671_v47  ;;  %v3434_v57 = vor.u32 %v4084_v45, %v3431_v51  ;;  %v3578_v39 = vor.u32 %v4120_v26, %v3575_v28  ;;  %v3509_v47 = vld [vmem:[#allocation10 + $0x460] sm:$0xf]  ;;  %v4022_v45 = vld [vmem:[#allocation10 + $0x1d4] sm:$0xf0] }
 0x10a   :  { %2004 = vmatpush.bf16.msrb.mxu1 %v3218_v48  ;;  %1993 = vmatpush.bf16.msrb.mxu0 %v2978_v50  ;;  %v3294_v48 = vor.u32 %v4052_v52, %v3293_v41  ;;  %v3054_v50 = vor.u32 %v3992_v56, %v3053_v44  ;;  %v4106_v41 = vld [vmem:[#allocation10 + $0x474] sm:$0xf0]  ;;  %v4114_v52 = vld [vmem:[#allocation10 + $0x4bc] sm:$0xf]  ;;  %v3551_v44 = vld [vmem:[#allocation10 + $0x4d0] sm:$0xf0] }
 0x10b   :  { %v3173_v56 = vld [vmem:[#allocation10 + $0x1c0] sm:$0xf]  ;;  %v3554_v54 = vor.u32 %v4114_v52, %v3551_v44  ;;  %v4142_v28 = vld [vmem:[#allocation10 + $0x594] sm:$0xf0]  ;;  %v3247_v52 = vld [vmem:[#allocation10 + $0x268] sm:$0xf0] }
 0x10c   :  { %v3174_v55 = vor.u32 %v4022_v45, %v3173_v56  ;;  %v3653_v26 = vld [vmem:[#allocation10 + $0x580] sm:$0xf]  ;;  %v3007_v44 = vld [vmem:[#allocation10 + $0x88] sm:$0xf0] }
 0x10d   :  { %1979 = vmatpush.bf16.msra.mxu3 %v3574_v0  ;;  %1968 = vmatpush.bf16.msra.mxu2 %v3334_v10  ;;  %v4132_v0 = vld [vmem:[#allocation10 + $0x54c] sm:$0xf]  ;;  %v3383_v10 = vld [vmem:[#allocation10 + $0x380] sm:$0xf0] }
 0x10e   :  { %2005 = vmatpush.bf16.msrb.mxu1 %v3194_v1  ;;  %1994 = vmatpush.bf16.msrb.mxu0 %v2954_v6  ;;  %v3030_v1 = vor.u32 %v3986_v59, %v3029_v58  ;;  %v3410_v6 = vor.u32 %v4078_v60, %v3407_v61  ;;  %v3386_v18 = vor.u32 %v4072_v9, %v3383_v10  ;;  %v4108_v58 = vld [vmem:[#allocation10 + $0x48c] sm:$0xf]  ;;  %v3527_v59 = vld [vmem:[#allocation10 + $0x4a0] sm:$0xf0]  ;;  %v3149_v60 = vld [vmem:[#allocation10 + $0x190] sm:$0xf] }
 0x10f   :  { %v4016_v61 = vld [vmem:[#allocation10 + $0x1a4] sm:$0xf0]  ;;  %v3530_v7 = vor.u32 %v4108_v58, %v3527_v59  ;;  %v2983_v58 = vld [vmem:[#allocation10 + $0x58] sm:$0xf0] }
 0x110   :  { %1969 = vmatmul.bf16.vlgmr.msra.gmra.mxu2 %v4568_v38  ;;  %v3150_v8 = vor.u32 %v4016_v61, %v3149_v60 }
 0x111   :  { %2013 = vmatpush.bf16.msrb.mxu2 %v3506_v12  ;;  %1980 = vmatpush.bf16.msra.mxu3 %v3550_v16  ;;  %v3246_v12 = vor.u32 %v4040_v5, %v3245_v4  ;;  %v3221_v16 = vld [vmem:[#allocation10 + $0x220] sm:$0xf]  ;;  %v3995_v5 = vld [vmem:[#allocation10 + $0x104] sm:$0xf] }
 0x112   :  { %2039 = vmatpush.bf16.msra.mxu0 %v3126_v11  ;;  %2006 = vmatpush.bf16.msrb.mxu1 %v3170_v17  ;;  %v3626_v11 = vor.u32 %v4132_v0, %v3623_v3  ;;  %v4034_v17 = vld [vmem:[#allocation10 + $0x234] sm:$0xf0]  ;;  %v3319_v3 = vld [vmem:[#allocation10 + $0x2f8] sm:$0xf0] }
 0x113   :  { %1995 = vmatmul.bf16.vlgmr.msrb.gmra.mxu0 %v4556_v24  ;;  %v4154_v0 = vld [vmem:[#allocation10 + $0x5f4] sm:$0xf0] }
 0x115   :  { %2014 = vmatpush.bf16.msrb.mxu2 %v3482_v29  ;;  %1981 = vmatpush.bf16.msra.mxu3 %v3526_v32  ;;  %v3197_v29 = vld [vmem:[#allocation10 + $0x1f0] sm:$0xf]  ;;  %v4060_v32 = vld [vmem:[#allocation10 + $0x30c] sm:$0xf] }
 0x116   :  { %2040 = vmatpush.bf16.msra.mxu0 %v3102_v25  ;;  %2007 = vmatpush.bf16.msrb.mxu1 %v3146_v33  ;;  %v3222_v25 = vor.u32 %v4034_v17, %v3221_v16  ;;  %v2957_v33 = vld [vmem:[#allocation10 + $0x10] sm:$0xf]  ;;  %v3338_v51 = vor.u32 %v4060_v32, %v3335_v35  ;;  %v4049_v16 = vld [vmem:[#allocation10 + $0x2b4] sm:$0xf]  ;;  %v3295_v17 = vld [vmem:[#allocation10 + $0x2c8] sm:$0xf0] }
 0x117   :  { %v3298_v22 = vor.u32 %v4049_v16, %v3295_v17  ;;  %v3031_v32 = vld [vmem:[#allocation10 + $0xb8] sm:$0xf0]  ;;  %v3557_v16 = vld [vmem:[#allocation10 + $0x4c0] sm:$0xf]  ;;  %v4118_v17 = vld [vmem:[#allocation10 + $0x4d4] sm:$0xf0] }
 0x118   :  { %1982 = vmatmul.bf16.vlgmr.msra.gmra.mxu3 %v4572_v2 }
 0x119   :  { %2026 = vmatpush.bf16.msrb.mxu3 %v3698_v36  ;;  %2008 = vmatmul.bf16.vlgmr.msrb.gmra.mxu1 %v4559_v42  ;;  %v4007_v36 = vld [vmem:[#allocation10 + $0x164] sm:$0xf] }
 0x11a   :  { %2052 = vmatpush.bf16.msra.mxu1 %v3318_v37  ;;  %2041 = vmatpush.bf16.msra.mxu0 %v3078_v40  ;;  %v3127_v37 = vld [vmem:[#allocation10 + $0x178] sm:$0xf0]  ;;  %v3198_v40 = vor.u32 %v4028_v30, %v3197_v29  ;;  %v4043_v29 = vld [vmem:[#allocation10 + $0x284] sm:$0xf] }
 0x11b   :  { %2015 = vmatpush.bf16.msrb.mxu2 %v3458_v43  ;;  %v2958_v43 = vor.u32 %v3968_v34, %v2957_v33  ;;  %v3271_v30 = vld [vmem:[#allocation10 + $0x298] sm:$0xf0]  ;;  %v3654_v34 = vor.u32 %v4142_v28, %v3653_v26  ;;  %v4162_v26 = vld [vmem:[#allocation14 + $0x38] sm:$0xff]  ;;  %v3533_v28 = vld [vmem:[#allocation10 + $0x490] sm:$0xf] }
 0x11c   :  { %v3274_v35 = vor.u32 %v4043_v29, %v3271_v30  ;;  %v4112_v29 = vld [vmem:[#allocation10 + $0x4a4] sm:$0xf0]  ;;  %v4013_v30 = vld [vmem:[#allocation10 + $0x194] sm:$0xf] }
 0x11d   :  { %2027 = vmatpush.bf16.msrb.mxu3 %v3674_v46  ;;  %v3130_v46 = vor.u32 %v4007_v36, %v3127_v37  ;;  %v3413_v36 = vld [vmem:[#allocation10 + $0x3a0] sm:$0xf]  ;;  %v4082_v37 = vld [vmem:[#allocation10 + $0x3b4] sm:$0xf0] }
 0x11e   :  { %2053 = vmatpush.bf16.msra.mxu1 %v3294_v48  ;;  %2042 = vmatpush.bf16.msra.mxu0 %v3054_v50  ;;  %v3510_v48 = vor.u32 %v4106_v41, %v3509_v47  ;;  %v4001_v50 = vld [vmem:[#allocation10 + $0x134] sm:$0xf]  ;;  %v4136_v47 = vld [vmem:[#allocation10 + $0x564] sm:$0xf0]  ;;  %v3414_v56 = vor.u32 %v4082_v37, %v3413_v36  ;;  %v4161_v36 = vld [vmem:[#allocation14 + $0x30] sm:$0xff] }
 0x11f   :  { %2016 = vmatpush.bf16.msrb.mxu2 %v3434_v57  ;;  %v4100_v57 = vld [vmem:[#allocation10 + $0x444] sm:$0xf0]  ;;  %v4037_v41 = vld [vmem:[#allocation10 + $0x254] sm:$0xf] }
 0x120   :  { %v3486_v4 = vor.u32 %v4100_v57, %v3485_v49  ;;  %v3605_v49 = vld [vmem:[#allocation10 + $0x520] sm:$0xf]  ;;  %v3971_v57 = vld [vmem:[#allocation10 + $0x44] sm:$0xf] }
 0x121   :  { %2028 = vmatpush.bf16.msrb.mxu3 %v3650_v62  ;;  %v3701_v62 = vld [vmem:[#allocation10 + $0x5e0] sm:$0xf] }
 0x122   :  { %2054 = vmatpush.bf16.msra.mxu1 %v3270_v63  ;;  %2043 = vmatpush.bf16.msra.mxu0 %v3030_v1  ;;  %v3106_v63 = vor.u32 %v4001_v50, %v3103_v53  ;;  %v4055_v1 = vld [vmem:[#allocation10 + $0x2e4] sm:$0xf]  ;;  %v3702_v9 = vor.u32 %v4154_v0, %v3701_v62  ;;  %v4130_v53 = vld [vmem:[#allocation10 + $0x534] sm:$0xf0]  ;;  %v3365_v62 = vld [vmem:[#allocation10 + $0x340] sm:$0xf] }
 0x123   :  { %2017 = vmatpush.bf16.msrb.mxu2 %v3410_v6  ;;  %v3079_v6 = vld [vmem:[#allocation10 + $0x118] sm:$0xf0]  ;;  %v3322_v10 = vor.u32 %v4055_v1, %v3319_v3  ;;  %v3606_v60 = vor.u32 %v4130_v53, %v3605_v49  ;;  %v3581_v0 = vld [vmem:[#allocation10 + $0x4f0] sm:$0xf]  ;;  %v2986_v1 = vor.u32 %v3971_v57, %v2983_v58  ;;  %v4124_v3 = vld [vmem:[#allocation10 + $0x504] sm:$0xf0] }
 0x124   :  { %v4159_v49 = vld [vmem:[#allocation14 + $0x20] sm:$0xff]  ;;  %v4133_v57 = vld [vmem:[#allocation10 + $0x554] sm:$0xf] }
 0x125   :  { %2029 = vmatpush.bf16.msrb.mxu3 %v3626_v11  ;;  %v3461_v11 = vld [vmem:[#allocation10 + $0x400] sm:$0xf]  ;;  %v3631_v58 = vld [vmem:[#allocation10 + $0x568] sm:$0xf0] }
 0x126   :  { %2055 = vmatpush.bf16.msra.mxu1 %v3246_v12  ;;  %2044 = vmatpush.bf16.msra.mxu0 %v3006_v14  ;;  %v4094_v12 = vld [vmem:[#allocation10 + $0x414] sm:$0xf0]  ;;  %v3082_v14 = vor.u32 %v3995_v5, %v3079_v6  ;;  %v3199_v5 = vld [vmem:[#allocation10 + $0x208] sm:$0xf0]  ;;  %v3965_v6 = vld [vmem:[#allocation10 + $0x14] sm:$0xf] }
 0x127   :  { %2018 = vmatpush.bf16.msrb.mxu2 %v3386_v18  ;;  %v3989_v18 = vld [vmem:[#allocation10 + $0xd4] sm:$0xf]  ;;  %v3462_v20 = vor.u32 %v4094_v12, %v3461_v11  ;;  %v3341_v11 = vld [vmem:[#allocation10 + $0x310] sm:$0xf]  ;;  %v4064_v12 = vld [vmem:[#allocation10 + $0x324] sm:$0xf0] }
 0x129   :  { %2030 = vmatpush.bf16.msrb.mxu3 %v3602_v23  ;;  %v3437_v23 = vld [vmem:[#allocation10 + $0x3d0] sm:$0xf] }
 0x12a   :  { %2056 = vmatpush.bf16.msra.mxu1 %v3222_v25  ;;  %2045 = vmatpush.bf16.msra.mxu0 %v2982_v27  ;;  %v4088_v25 = vld [vmem:[#allocation10 + $0x3e4] sm:$0xf0]  ;;  %v3058_v27 = vor.u32 %v3989_v18, %v3055_v19  ;;  %v4019_v18 = vld [vmem:[#allocation10 + $0x1c4] sm:$0xf]  ;;  %v3175_v19 = vld [vmem:[#allocation10 + $0x1d8] sm:$0xf0] }
 0x12b   :  { %2019 = vmatpush.bf16.msrb.mxu2 %v3362_v31  ;;  %v3983_v31 = vld [vmem:[#allocation10 + $0xa4] sm:$0xf]  ;;  %v3438_v33 = vor.u32 %v4088_v25, %v3437_v23  ;;  %v4097_v23 = vld [vmem:[#allocation10 + $0x434] sm:$0xf]  ;;  %v3487_v25 = vld [vmem:[#allocation10 + $0x448] sm:$0xf0] }
 0x12d   :  { %2031 = vmatpush.bf16.msrb.mxu3 %v3578_v39  ;;  %v3629_v39 = vld [vmem:[#allocation10 + $0x550] sm:$0xf] }
 0x12e   :  { %2057 = vmatpush.bf16.msra.mxu1 %v3198_v40  ;;  %2046 = vmatpush.bf16.msra.mxu0 %v2958_v43  ;;  %v3034_v40 = vor.u32 %v3983_v31, %v3031_v32  ;;  %v3977_v43 = vld [vmem:[#allocation10 + $0x74] sm:$0xf]  ;;  %v3630_v45 = vor.u32 %v4136_v47, %v3629_v39  ;;  %v3151_v31 = vld [vmem:[#allocation10 + $0x1a8] sm:$0xf0]  ;;  %v4151_v32 = vld [vmem:[#allocation10 + $0x5e4] sm:$0xf] }
 0x12f   :  { %2020 = vmatpush.bf16.msrb.mxu2 %v3338_v51  ;;  %v3250_v51 = vor.u32 %v4037_v41, %v3247_v52  ;;  %v3010_v50 = vor.u32 %v3977_v43, %v3007_v44  ;;  %v3154_v37 = vor.u32 %v4013_v30, %v3151_v31  ;;  %v3463_v47 = vld [vmem:[#allocation10 + $0x418] sm:$0xf0]  ;;  %v4145_v41 = vld [vmem:[#allocation10 + $0x5b4] sm:$0xf]  ;;  %v3679_v52 = vld [vmem:[#allocation10 + $0x5c8] sm:$0xf0] }
 0x130   :  { %v4160_v44 = vld [vmem:[#allocation14 + $0x28] sm:$0xff]  ;;  %v4166_v30 = vld [vmem:[#allocation14 + $0x58] sm:$0xff] }
 0x131   :  { %2032 = vmatpush.bf16.msrb.mxu3 %v3554_v54  ;;  %2047 = vmatmul.bf16.vlgmr.msra.gmra.mxu0 %v4556_v24  ;;  %v4031_v54 = vld [vmem:[#allocation10 + $0x224] sm:$0xf] }
 0x132   :  { %2091 = vmatpush.bf16.msrb.mxu0 %v3130_v46  ;;  %2058 = vmatpush.bf16.msra.mxu1 %v3174_v55  ;;  %v3389_v46 = vld [vmem:[#allocation10 + $0x370] sm:$0xf]  ;;  %v3223_v55 = vld [vmem:[#allocation10 + $0x238] sm:$0xf0]  ;;  %v4178_v31 = vld [vmem:[#allocation14 + $0xb8] sm:$0xff] }
 0x133   :  { %2065 = vmatpush.bf16.msra.mxu2 %v3510_v48  ;;  %v4076_v48 = vld [vmem:[#allocation10 + $0x384] sm:$0xf0]  ;;  %v3226_v61 = vor.u32 %v4031_v54, %v3223_v55  ;;  %v4079_v54 = vld [vmem:[#allocation10 + $0x3a4] sm:$0xf]  ;;  %v3415_v55 = vld [vmem:[#allocation10 + $0x3b8] sm:$0xf0] }
 0x134   :  { %2021 = vmatmul.bf16.vlgmr.msrb.gmra.mxu2 %v4568_v38  ;;  %v3390_v59 = vor.u32 %v4076_v48, %v3389_v46  ;;  %v3655_v48 = vld [vmem:[#allocation10 + $0x598] sm:$0xf0] }
 0x135   :  { %2033 = vmatpush.bf16.msrb.mxu3 %v3530_v7  ;;  %v2959_v7 = vld [vmem:[#allocation10 + $0x28] sm:$0xf0] }
 0x136   :  { %2092 = vmatpush.bf16.msrb.mxu0 %v3106_v63  ;;  %2059 = vmatpush.bf16.msra.mxu1 %v3150_v8  ;;  %v4070_v63 = vld [vmem:[#allocation10 + $0x354] sm:$0xf0] }
 0x137   :  { %2066 = vmatpush.bf16.msra.mxu2 %v3486_v4  ;;  %v4025_v4 = vld [vmem:[#allocation10 + $0x1f4] sm:$0xf]  ;;  %v3366_v8 = vor.u32 %v4070_v63, %v3365_v62  ;;  %v3634_v63 = vor.u32 %v4133_v57, %v3631_v58 }
 0x138   :  { %2034 = vmatmul.bf16.vlgmr.msrb.gmra.mxu3 %v4572_v2  ;;  %v4172_v58 = vld [vmem:[#allocation14 + $0x88] sm:$0xff] }
 0x139   :  { %2078 = vmatpush.bf16.msra.mxu3 %v3702_v9  ;;  %2060 = vmatmul.bf16.vlgmr.msra.gmra.mxu1 %v4559_v42  ;;  %v3582_v9 = vor.u32 %v4124_v3, %v3581_v0  ;;  %v4073_v0 = vld [vmem:[#allocation10 + $0x374] sm:$0xf]  ;;  %v4127_v3 = vld [vmem:[#allocation10 + $0x524] sm:$0xf] }
 0x13a   :  { %2104 = vmatpush.bf16.msrb.mxu1 %v3322_v10  ;;  %2093 = vmatpush.bf16.msrb.mxu0 %v3082_v14  ;;  %v3202_v10 = vor.u32 %v4025_v4, %v3199_v5  ;;  %v2962_v14 = vor.u32 %v3965_v6, %v2959_v7  ;;  %v3607_v4 = vld [vmem:[#allocation10 + $0x538] sm:$0xf0] }
 0x13b   :  { %2067 = vmatpush.bf16.msra.mxu2 %v3462_v20  ;;  %v3342_v20 = vor.u32 %v4064_v12, %v3341_v11  ;;  %v4157_v6 = vld [vmem:[#allocation14 + $0x10] sm:$0xff]  ;;  %v4121_v11 = vld [vmem:[#allocation10 + $0x4f4] sm:$0xf]  ;;  %v3583_v12 = vld [vmem:[#allocation10 + $0x508] sm:$0xf0] }
 0x13c   :  { %v4169_v7 = vld [vmem:[#allocation14 + $0x70] sm:$0xff] }
 0x13d   :  { %2079 = vmatpush.bf16.msra.mxu3 %v3678_v21  ;;  %v3514_v21 = vor.u32 %v4103_v13, %v3511_v15  ;;  %v4168_v15 = vld [vmem:[#allocation14 + $0x68] sm:$0xff] }
 0x13e   :  { %2105 = vmatpush.bf16.msrb.mxu1 %v3298_v22  ;;  %2094 = vmatpush.bf16.msrb.mxu0 %v3058_v27  ;;  %v3558_v22 = vor.u32 %v4118_v17, %v3557_v16  ;;  %v3178_v27 = vor.u32 %v4019_v18, %v3175_v19  ;;  %v3586_v17 = vor.u32 %v4121_v11, %v3583_v12  ;;  %v4061_v18 = vld [vmem:[#allocation10 + $0x314] sm:$0xf]  ;;  %v3343_v19 = vld [vmem:[#allocation10 + $0x328] sm:$0xf0] }
 0x13f   :  { %2068 = vmatpush.bf16.msra.mxu2 %v3438_v33  ;;  %v3703_v33 = vld [vmem:[#allocation10 + $0x5f8] sm:$0xf0]  ;;  %v4183_v11 = vld [vmem:[#allocation14 + $0xe0] sm:$0xff] }
 0x140   :  { %v3706_v39 = vor.u32 %v4151_v32, %v3703_v33 }
 0x141   :  { %2080 = vmatpush.bf16.msra.mxu3 %v3654_v34  ;;  %v3490_v34 = vor.u32 %v4097_v23, %v3487_v25  ;;  %v3346_v23 = vor.u32 %v4061_v18, %v3343_v19  ;;  %v4155_v25 = vld [vmem:[#allocation14] sm:$0xff] }
 0x142   :  { %2106 = vmatpush.bf16.msrb.mxu1 %v3274_v35  ;;  %2095 = vmatpush.bf16.msrb.mxu0 %v3034_v40  ;;  %v3534_v35 = vor.u32 %v4112_v29, %v3533_v28  ;;  %v4091_v40 = vld [vmem:[#allocation10 + $0x404] sm:$0xf]  ;;  %v4109_v28 = vld [vmem:[#allocation10 + $0x494] sm:$0xf]  ;;  %v3535_v29 = vld [vmem:[#allocation10 + $0x4a8] sm:$0xf0] }
 0x143   :  { %2069 = vmatpush.bf16.msra.mxu2 %v3414_v56  ;;  %v3466_v43 = vor.u32 %v4091_v40, %v3463_v47  ;;  %v3682_v56 = vor.u32 %v4145_v41, %v3679_v52  ;;  %v3538_v33 = vor.u32 %v4109_v28, %v3535_v29  ;;  %v4163_v41 = vld [vmem:[#allocation14 + $0x40] sm:$0xff] }
 0x144   :  { %v4175_v52 = vld [vmem:[#allocation14 + $0xa0] sm:$0xff] }
 0x145   :  { %2081 = vmatpush.bf16.msra.mxu3 %v3630_v45  ;;  %v4085_v45 = vld [vmem:[#allocation10 + $0x3d4] sm:$0xf] }
 0x146   :  { %2107 = vmatpush.bf16.msrb.mxu1 %v3250_v51  ;;  %2096 = vmatpush.bf16.msrb.mxu0 %v3010_v50  ;;  %v3439_v51 = vld [vmem:[#allocation10 + $0x3e8] sm:$0xf0] }
 0x147   :  { %2070 = vmatpush.bf16.msra.mxu2 %v3390_v59  ;;  %v3442_v50 = vor.u32 %v4085_v45, %v3439_v51  ;;  %v4158_v59 = vld [vmem:[#allocation14 + $0x18] sm:$0xff] }
 0x148   :  { %v4604_v51 = vld [vmem:[#allocation13] sm:$0x3f] }
 0x149   :  { %2082 = vmatpush.bf16.msra.mxu3 %v3606_v60  ;;  %v4170_v60 = vld [vmem:[#allocation14 + $0x78] sm:$0xff] }
 0x14a   :  { %2108 = vmatpush.bf16.msrb.mxu1 %v3226_v61  ;;  %2097 = vmatpush.bf16.msrb.mxu0 %v2986_v1  ;;  %v3418_v61 = vor.u32 %v4079_v54, %v3415_v55  ;;  %v2165_v54 = vperm.slane %v4604_v51, 0 }
 0x14b   :  { %2071 = vmatpush.bf16.msra.mxu2 %v3366_v8  ;;  %v3610_v8 = vor.u32 %v4127_v3, %v3607_v4 }
 0x14d   :  { %2083 = vmatpush.bf16.msra.mxu3 %v3582_v9  ;;  %v4588_v46 = vpop.f32.mrf.mxu0  ;;  %v4067_v9 = vld [vmem:[#allocation10 + $0x344] sm:$0xf] }
 0x14e   :  { %2109 = vmatpush.bf16.msrb.mxu1 %v3202_v10  ;;  %2098 = vmatpush.bf16.msrb.mxu0 %v2962_v14  ;;  %v3367_v10 = vld [vmem:[#allocation10 + $0x358] sm:$0xf0]  ;;  %v4156_v14 = vld [vmem:[#allocation14 + $0x8] sm:$0xff] }
 0x14f   :  { %2072 = vmatpush.bf16.msra.mxu2 %v3342_v20  ;;  %v3370_v13 = vor.u32 %v4067_v9, %v3367_v10  ;;  %v2166_v9 = vperm.slane %v4604_v51, 1 }
 0x151   :  { %2084 = vmatpush.bf16.msra.mxu3 %v3558_v22  ;;  %2099 = vmatmul.bf16.vlgmr.msrb.gmra.mxu0 %v4556_v24  ;;  %v4139_v24 = vld [vmem:[#allocation10 + $0x584] sm:$0xf]  ;;  %v3559_v22 = vld [vmem:[#allocation10 + $0x4d8] sm:$0xf0] }
 0x152   :  { %2583 = vmatpush.bf16.msra.mxu0 %v4162_v26  ;;  %2110 = vmatpush.bf16.msrb.mxu1 %v3178_v27  ;;  %v3658_v53 = vor.u32 %v4139_v24, %v3655_v48  ;;  %v4167_v26 = vld [vmem:[#allocation14 + $0x60] sm:$0xff] }
 0x153   :  { %2117 = vmatpush.bf16.msrb.mxu2 %v3514_v21  ;;  %v4115_v21 = vld [vmem:[#allocation10 + $0x4c4] sm:$0xf] }
 0x154   :  { %2073 = vmatmul.bf16.vlgmr.msra.gmra.mxu2 %v4568_v38  ;;  %v3562_v27 = vor.u32 %v4115_v21, %v3559_v22  ;;  %v4181_v22 = vld [vmem:[#allocation14 + $0xd0] sm:$0xff] }
 0x155   :  { %2085 = vmatpush.bf16.msra.mxu3 %v3534_v35  ;;  %v4592_v62 = vpop.f32.mrf.mxu1  ;;  %v1842_v1 = vpop.f32.mrf.mxu0  ;;  %v4165_v35 = vld [vmem:[#allocation14 + $0x50] sm:$0xff] }
 0x156   :  { %2584 = vmatpush.bf16.msra.mxu0 %v4161_v36  ;;  %2111 = vmatpush.bf16.msrb.mxu1 %v3154_v37  ;;  %v4177_v36 = vld [vmem:[#allocation14 + $0xb0] sm:$0xff]  ;;  %v4164_v37 = vld [vmem:[#allocation14 + $0x48] sm:$0xff] }
 0x157   :  { %2118 = vmatpush.bf16.msrb.mxu2 %v3490_v34  ;;  %v4185_v1 = vld [vmem:[#allocation14 + $0xf0] sm:$0xff] }
 0x158   :  { %2086 = vmatmul.bf16.vlgmr.msra.gmra.mxu3 %v4572_v2 }
 0x159   :  { %2130 = vmatpush.bf16.msrb.mxu3 %v3706_v39  ;;  %2112 = vmatmul.bf16.vlgmr.msrb.gmra.mxu1 %v4559_v42  ;;  %v3391_v42 = vld [vmem:[#allocation10 + $0x388] sm:$0xf0]  ;;  %v4176_v39 = vld [vmem:[#allocation14 + $0xa8] sm:$0xff] }
 0x15a   :  { %2585 = vmatpush.bf16.msra.mxu0 %v4160_v44  ;;  %2596 = vmatpush.bf16.msra.mxu1 %v4170_v60  ;;  %v3394_v5 = vor.u32 %v4073_v0, %v3391_v42  ;;  %v4174_v44 = vld [vmem:[#allocation14 + $0x98] sm:$0xff] }
 0x15b   :  { %2119 = vmatpush.bf16.msrb.mxu2 %v3466_v43 }
 0x15d   :  { %2131 = vmatpush.bf16.msrb.mxu3 %v3682_v56  ;;  %v1855_v16 = vpop.f32.mrf.mxu1  ;;  %v4594_v20 = vpop.f32.mrf.mxu0  ;;  %v1854_v56 = vadd.f32 %v4592_v62, %v4588_v46  ;;  %v4171_v62 = vld [vmem:[#allocation14 + $0x80] sm:$0xff] }
 0x15e   :  { %2586 = vmatpush.bf16.msra.mxu0 %v4159_v49  ;;  %2597 = vmatpush.bf16.msra.mxu1 %v4169_v7  ;;  %v4184_v7 = vld [vmem:[#allocation14 + $0xe8] sm:$0xff] }
 0x15f   :  { %2120 = vmatpush.bf16.msrb.mxu2 %v3442_v50  ;;  %v4173_v50 = vld [vmem:[#allocation14 + $0x90] sm:$0xff] }
 0x161   :  { %2132 = vmatpush.bf16.msrb.mxu3 %v3658_v53 }
 0x162   :  { %2587 = vmatpush.bf16.msra.mxu0 %v4158_v59  ;;  %2598 = vmatpush.bf16.msra.mxu1 %v4168_v15 }
 0x163   :  { %2121 = vmatpush.bf16.msrb.mxu2 %v3418_v61 }
 0x165   :  { %2133 = vmatpush.bf16.msrb.mxu3 %v3634_v63  ;;  %v1905_v32 = vpop.f32.mrf.mxu1  ;;  %v1894_v34 = vpop.f32.mrf.mxu0  ;;  %v4186_v63 = vld [vmem:[#allocation14 + $0xf8] sm:$0xff] }
 0x166   :  { %2588 = vmatpush.bf16.msra.mxu0 %v4157_v6  ;;  %2599 = vmatpush.bf16.msra.mxu1 %v4167_v26  ;;  %v1906_v3 = vadd.f32 %v1905_v32, %v4594_v20  ;;  %v4179_v34 = vld [vmem:[#allocation14 + $0xc0] sm:$0xff] }
 0x167   :  { %2122 = vmatpush.bf16.msrb.mxu2 %v3394_v5 }
 0x169   :  { %2134 = vmatpush.bf16.msrb.mxu3 %v3610_v8 }
 0x16a   :  { %2589 = vmatpush.bf16.msra.mxu0 %v4156_v14  ;;  %2600 = vmatpush.bf16.msra.mxu1 %v4166_v30  ;;  %v2167_v30 = vperm.slane %v4604_v51, 2 }
 0x16b   :  { %2123 = vmatpush.bf16.msrb.mxu2 %v3370_v13 }
 0x16d   :  { %2135 = vmatpush.bf16.msrb.mxu3 %v3586_v17  ;;  %v1907_v40 = vpop.f32.mrf.mxu1  ;;  %v4598_v47 = vpop.f32.mrf.mxu0  ;;  %v4182_v17 = vld [vmem:[#allocation14 + $0xd8] sm:$0xff] }
 0x16e   :  { %2590 = vmatpush.bf16.msra.mxu0 %v4155_v25  ;;  %2601 = vmatpush.bf16.msra.mxu1 %v4165_v35  ;;  %v4194_v35 = vld [vmem:[#allocation14 + $0x138] sm:$0xff] }
 0x16f   :  { %2124 = vmatpush.bf16.msrb.mxu2 %v3346_v23 }
 0x171   :  { %2136 = vmatpush.bf16.msrb.mxu3 %v3562_v27  ;;  %v4180_v27 = vld [vmem:[#allocation14 + $0xc8] sm:$0xff] }
 0x172   :  { %2125 = vmatmul.bf16.vlgmr.msrb.gmra.mxu2 %v4568_v38  ;;  %2602 = vmatpush.bf16.msra.mxu1 %v4164_v37  ;;  %v4600_v38 = vld [vmem:[#allocation11] sm:$0x3f] }
 0x173   :  { %2609 = vmatpush.bf16.msra.mxu2 %v4178_v31  ;;  %v1866_v43 = vpop.f32.mrf.mxu2  ;;  %v2145_v48 = vperm.slane %v4600_v38, 0  ;;  %v2146_v5 = vperm.slane %v4600_v38, 1  ;;  %v2147_v26 = vperm.slane %v4600_v38, 2  ;;  %2635 = vmatpush.bf16.msrb.mxu0 %v4194_v35 }
 0x174   :  { %v1867_v24 = vadd.f32 %v1866_v43, %v1854_v56 }
 0x175   :  { %2137 = vmatpush.bf16.msrb.mxu3 %v3538_v33 }
 0x176   :  { %2603 = vmatpush.bf16.msra.mxu1 %v4163_v41  ;;  %v4192_v41 = vld [vmem:[#allocation14 + $0x128] sm:$0xff] }
 0x177   :  { %2610 = vmatpush.bf16.msra.mxu2 %v4177_v36 }
 0x178   :  { %2138 = vmatmul.bf16.vlgmr.msrb.gmra.mxu3 %v4572_v2  ;;  %v1957_v45 = vpop.f32.mrf.mxu1  ;;  %v1946_v2 = vpop.f32.mrf.mxu0 }
 0x179   :  { %2622 = vmatpush.bf16.msra.mxu3 %v4186_v63  ;;  %v1958_v23 = vadd.f32 %v1957_v45, %v4598_v47 }
 0x17b   :  { %2611 = vmatpush.bf16.msra.mxu2 %v4176_v39  ;;  %v1879_v49 = vpop.f32.mrf.mxu3  ;;  %v1868_v55 = vpop.f32.mrf.mxu2  ;;  %v4193_v39 = vld [vmem:[#allocation14 + $0x130] sm:$0xff] }
 0x17c   :  { %v1880_v53 = vadd.f32 %v1879_v49, %v1867_v24  ;;  %2636 = vmatpush.bf16.msrb.mxu0 %v4193_v39  ;;  %v4189_v24 = vld [vmem:[#allocation14 + $0x110] sm:$0xff] }
 0x17d   :  { %2623 = vmatpush.bf16.msra.mxu3 %v4185_v1 }
 0x17e   :  { %v2157_v57 = vmul.f32 %v2145_v48, %v1880_v53 }
 0x17f   :  { %2612 = vmatpush.bf16.msra.mxu2 %v4175_v52  ;;  %v4191_v52 = vld [vmem:[#allocation14 + $0x120] sm:$0xff] }
 0x180   :  { %v2177_v59 = vadd.f32 %v2165_v54, %v2157_v57  ;;  %v1959_v60 = vpop.f32.mrf.mxu1  ;;  %2637 = vmatpush.bf16.msrb.mxu0 %v4192_v41  ;;  %v4188_v54 = vld [vmem:[#allocation14 + $0x108] sm:$0xff]  ;;  %v2168_v57 = vperm.slane %v4604_v51, 3 }
 0x181   :  { %2624 = vmatpush.bf16.msra.mxu3 %v4184_v7 }
 0x182   :  { %v2183_v46 = vmax.f32 %v2177_v59, 0.0 }
 0x183   :  { %2613 = vmatpush.bf16.msra.mxu2 %v4174_v44  ;;  %v1881_v61 = vpop.f32.mrf.mxu3  ;;  %v1918_v42 = vpop.f32.mrf.mxu2  ;;  %v4190_v44 = vld [vmem:[#allocation14 + $0x118] sm:$0xff] }
 0x184   :  { %v2189_v0 = vpack.c.bf16 %v2183_v46, %v2183_v46  ;;  %v1919_v4 = vadd.f32 %v1918_v42, %v1906_v3  ;;  %2638 = vmatpush.bf16.msrb.mxu0 %v4191_v52  ;;  %v4187_v46 = vld [vmem:[#allocation14 + $0x100] sm:$0xff]  ;;  %v4201_v42 = vld [vmem:[#allocation14 + $0x170] sm:$0xff]  ;;  %v4200_v3 = vld [vmem:[#allocation14 + $0x168] sm:$0xff] }
 0x185   :  { %2625 = vmatpush.bf16.msra.mxu3 %v4183_v11  ;;  %v4218_v52 = vld [vmem:[%s4634_s8] ss:$0 sm:$0xff] }
 0x186   :  { %2591 = vmatmul.bf16.vlgmr.msra.gmra.mxu0 %v2189_v0 }
 0x187   :  { %2614 = vmatpush.bf16.msra.mxu2 %v4173_v50  ;;  %v2148_v50 = vperm.slane %v4600_v38, 3 }
 0x188   :  { %2639 = vmatpush.bf16.msrb.mxu0 %v4190_v44 }
 0x189   :  { %2626 = vmatpush.bf16.msra.mxu3 %v4182_v17  ;;  %v2169_v17 = vperm.slane %v4604_v51, 4 }
 0x18b   :  { %2615 = vmatpush.bf16.msra.mxu2 %v4172_v58  ;;  %v1931_v6 = vpop.f32.mrf.mxu3  ;;  %v1920_v10 = vpop.f32.mrf.mxu2 }
 0x18c   :  { %v1932_v8 = vadd.f32 %v1931_v6, %v1919_v4  ;;  %2640 = vmatpush.bf16.msrb.mxu0 %v4189_v24  ;;  %v4199_v4 = vld [vmem:[#allocation14 + $0x160] sm:$0xff]  ;;  %v4198_v6 = vld [vmem:[#allocation14 + $0x158] sm:$0xff]  ;;  %v4197_v10 = vld [vmem:[#allocation14 + $0x150] sm:$0xff] }
 0x18d   :  { %2627 = vmatpush.bf16.msra.mxu3 %v4181_v22 }
 0x18e   :  { %v2158_v12 = vmul.f32 %v2146_v5, %v1932_v8 }
 0x18f   :  { %2616 = vmatpush.bf16.msra.mxu2 %v4171_v62  ;;  %v4202_v62 = vld [vmem:[#allocation14 + $0x178] sm:$0xff] }
 0x190   :  { %v1996_v13 = vpop.f32.mrf.mxu0  ;;  %v2178_v14 = vadd.f32 %v2166_v9, %v2158_v12  ;;  %2641 = vmatpush.bf16.msrb.mxu0 %v4188_v54  ;;  %2648 = vmatpush.bf16.msrb.mxu1 %v4202_v62 }
 0x191   :  { %2628 = vmatpush.bf16.msra.mxu3 %v4180_v27 }
 0x192   :  { %v2184_v15 = vmax.f32 %v2178_v14, 0.0 }
 0x193   :  { %v1933_v16 = vpop.f32.mrf.mxu3  ;;  %v1970_v20 = vpop.f32.mrf.mxu2 }
 0x194   :  { %v2190_v18 = vpack.c.bf16 %v2184_v15, %v2184_v15  ;;  %v1971_v25 = vadd.f32 %v1970_v20, %v1958_v23  ;;  %2642 = vmatpush.bf16.msrb.mxu0 %v4187_v46  ;;  %2649 = vmatpush.bf16.msrb.mxu1 %v4201_v42  ;;  %v4196_v15 = vld [vmem:[#allocation14 + $0x148] sm:$0xff] }
 0x195   :  { %2629 = vmatpush.bf16.msra.mxu3 %v4179_v34 }
 0x196   :  { %v2009_v19 = vpop.f32.mrf.mxu1  ;;  %2604 = vmatmul.bf16.vlgmr.msra.gmra.mxu1 %v2190_v18 }
 0x197   :  { %v2010_v48 = vadd.f32 %v2009_v19, %v1996_v13  ;;  %v2149_v13 = vperm.slane %v4600_v38, 4 }
 0x198   :  { %v1998_v21 = vpop.f32.mrf.mxu0  ;;  %2650 = vmatpush.bf16.msrb.mxu1 %v4200_v3 }
 0x199   :  { %v4195_v21 = vld [vmem:[#allocation14 + $0x140] sm:$0xff] }
 0x19b   :  { %v1983_v28 = vpop.f32.mrf.mxu3  ;;  %v1972_v32 = vpop.f32.mrf.mxu2 }
 0x19c   :  { %v1984_v29 = vadd.f32 %v1983_v28, %v1971_v25  ;;  %2651 = vmatpush.bf16.msrb.mxu1 %v4199_v4 }
 0x19e   :  { %v2011_v31 = vpop.f32.mrf.mxu1  ;;  %v2159_v33 = vmul.f32 %v2147_v26, %v1984_v29 }
 0x1a0   :  { %v2179_v36 = vadd.f32 %v2167_v30, %v2159_v33  ;;  %2652 = vmatpush.bf16.msrb.mxu1 %v4198_v6  ;;  %v2150_v30 = vperm.slane %v4600_v38, 5  ;;  %v2170_v33 = vperm.slane %v4604_v51, 5 }
 0x1a2   :  { %v2185_v37 = vmax.f32 %v2179_v36, 0.0 }
 0x1a3   :  { %v1985_v40 = vpop.f32.mrf.mxu3 }
 0x1a4   :  { %v2191_v47 = vpack.c.bf16 %v2185_v37, %v2185_v37  ;;  %2653 = vmatpush.bf16.msrb.mxu1 %v4197_v10 }
 0x1a6   :  { %2617 = vmatmul.bf16.vlgmr.msra.gmra.mxu2 %v2191_v47 }
 0x1a8   :  { %2654 = vmatpush.bf16.msrb.mxu1 %v4196_v15 }
 0x1ac   :  { %2655 = vmatpush.bf16.msrb.mxu1 %v4195_v21 }
 0x1ae   :  { %v2048_v43 = vpop.f32.mrf.mxu0 }
 0x1b6   :  { %v2061_v45 = vpop.f32.mrf.mxu1  ;;  %v2050_v2 = vpop.f32.mrf.mxu0 }
 0x1b7   :  { %v2022_v56 = vpop.f32.mrf.mxu2  ;;  %v2062_v11 = vadd.f32 %v2061_v45, %v2048_v43 }
 0x1b8   :  { %v2023_v49 = vadd.f32 %v2022_v56, %v2010_v48 }
 0x1bb   :  { %v2035_v53 = vpop.f32.mrf.mxu3 }
 0x1bc   :  { %v2036_v55 = vadd.f32 %v2035_v53, %v2023_v49 }
 0x1be   :  { %v2063_v59 = vpop.f32.mrf.mxu1  ;;  %v2160_v60 = vmul.f32 %v2148_v50, %v2036_v55 }
 0x1bf   :  { %v2024_v58 = vpop.f32.mrf.mxu2 }
 0x1c0   :  { %v2180_v61 = vadd.f32 %v2168_v57, %v2160_v60 }
 0x1c2   :  { %v2186_v63 = vmax.f32 %v2180_v61, 0.0 }
 0x1c3   :  { %v2037_v0 = vpop.f32.mrf.mxu3 }
 0x1c4   :  { %v2192_v1 = vpack.c.bf16 %v2186_v63, %v2186_v63 }
 0x1c6   :  { %2630 = vmatmul.bf16.vlgmr.msra.gmra.mxu3 %v2192_v1 }
 0x1ce   :  { %v2100_v5 = vpop.f32.mrf.mxu0 }
 0x1d6   :  { %v2113_v8 = vpop.f32.mrf.mxu1  ;;  %v2102_v9 = vpop.f32.mrf.mxu0 }
 0x1d7   :  { %v2074_v7 = vpop.f32.mrf.mxu2  ;;  %v2114_v28 = vadd.f32 %v2113_v8, %v2100_v5 }
 0x1d8   :  { %v2075_v12 = vadd.f32 %v2074_v7, %v2062_v11 }
 0x1db   :  { %v2087_v14 = vpop.f32.mrf.mxu3 }
 0x1dc   :  { %v2088_v16 = vadd.f32 %v2087_v14, %v2075_v12 }
 0x1de   :  { %v2161_v18 = vmul.f32 %v2149_v13, %v2088_v16  ;;  %v2115_v20 = vpop.f32.mrf.mxu1 }
 0x1df   :  { %v2076_v19 = vpop.f32.mrf.mxu2 }
 0x1e0   :  { %v2181_v22 = vadd.f32 %v2169_v17, %v2161_v18 }
 0x1e2   :  { %v2187_v23 = vmax.f32 %v2181_v22, 0.0 }
 0x1e3   :  { %v2089_v25 = vpop.f32.mrf.mxu3 }
 0x1e4   :  { %v2193_v26 = vpack.c.bf16 %v2187_v23, %v2187_v23 }
 0x1e6   :  { %2643 = vmatmul.bf16.vlgmr.msrb.gmra.mxu0 %v2193_v26 }
 0x1f5   :  { %v2126_v27 = vpop.f32.mrf.mxu2 }
 0x1f6   :  { %v2127_v29 = vadd.f32 %v2126_v27, %v2114_v28 }
 0x1fb   :  { %v2139_v31 = vpop.f32.mrf.mxu3 }
 0x1fc   :  { %v2140_v32 = vadd.f32 %v2139_v31, %v2127_v29 }
 0x1fd   :  { %v2128_v35 = vpop.f32.mrf.mxu2 }
 0x1fe   :  { %v2162_v34 = vmul.f32 %v2150_v30, %v2140_v32 }
 0x200   :  { %v2182_v36 = vadd.f32 %v2170_v33, %v2162_v34 }
 0x202   :  { %v2188_v37 = vmax.f32 %v2182_v36, 0.0 }
 0x203   :  { %v2141_v39 = vpop.f32.mrf.mxu3  ;;  %v2592_v47 = vpop.f32.mrf.mxu0 }
 0x204   :  { %v2194_v40 = vpack.c.bf16 %v2188_v37, %v2188_v37  ;;  %v2593_v43 = vadd.f32 %v4218_v52, %v2592_v47 }
 0x206   :  { %2656 = vmatmul.bf16.vlgmr.msrb.gmra.mxu1 %v2194_v40 }
 0x20b   :  { %v2594_v41 = vpop.f32.mrf.mxu0 }
 0x213   :  { %v2605_v44 = vpop.f32.mrf.mxu1 }
 0x214   :  { %v2606_v38 = vadd.f32 %v2605_v44, %v2593_v43 }
 0x21b   :  { %v2607_v56 = vpop.f32.mrf.mxu1 }
 0x229   :  { %v2618_v45 = vpop.f32.mrf.mxu2 }
 0x22a   :  { %v2619_v2 = vadd.f32 %v2618_v45, %v2606_v38 }
 0x231   :  { %v2620_v51 = vpop.f32.mrf.mxu2 }
 0x249   :  { %v2631_v24 = vpop.f32.mrf.mxu3 }
 0x24a   :  { %v2632_v53 = vadd.f32 %v2631_v24, %v2619_v2 }
 0x251   :  { %v2633_v48 = vpop.f32.mrf.mxu3 }
 0x263   :  { %v2644_v49 = vpop.f32.mrf.mxu0 }
 0x264   :  { %v2645_v54 = vadd.f32 %v2644_v49, %v2632_v53 }
 0x26b   :  { %v2646_v50 = vpop.f32.mrf.mxu0 }
 0x283   :  { %v2657_v55 = vpop.f32.mrf.mxu1 }
 0x284   :  { %v2658_v57 = vadd.f32 %v2657_v55, %v2645_v54 }
 0x286   :  { %2661 = vst [vmem:[#allocation16] sm:$0xff] %v2658_v57 }
 0x287   :  { %2672 = dma.vmem_to_hbm [thread:$0]  %s2668_s3, 128, %s2670_s30, [#allocation4]  }
 0x28b   :  { %v2659_v58 = vpop.f32.mrf.mxu1 }
 0x28c   :  { %4445 = dma.done.wait [#allocation4], 128  }
 0x28d   :  { %4446 = vsyncadd [#allocation4], 4294967168 }
 0x28e   :  { %2677 = vsyncpa [#allocation3], 1 }
 0x28f   :  { %2678 = vsyncpa [#allocation6], 1 }
 0x290   :  { %2679 = vsyncpa [#allocation9], 1 }
 0x291   :  { %2680 = vsyncpa [#allocation12], 1 }
 0x292   :  { %2681 = vsyncpa [#allocation15], 1 }
 0x293   :  { %2682 = vsyncpa [#allocation4], 1 }

</bundles_post_ra>
